<compile_context>
chip_gen: v6e
topology: v6e:2x2x1
jax: 0.10.0
libtpu: 0.0.40
codegen_flags: <defaults>
</compile_context>

<pallas_src>
import jax
import jax.numpy as jnp
from jax.experimental import pallas as pl
from jax.experimental.pallas import tpu as pltpu


# ---------------------------------------------------------------------------
# Static per-layer schedule (shapes only; pure Python)
# ---------------------------------------------------------------------------
def _conv_schedule(L0, kernel_widths, pooling_widths):
    sched, L = [], L0
    for kw, pool in zip(kernel_widths, pooling_widths):
        pad = (kw - 1) // 2
        seg = L + 2 * pad              # per-batch zero-padded segment length
        Lc = seg - kw + 1              # conv output length ("same" for odd K)
        Lout = -(-Lc // pool)          # MaxPool ceil_mode=True
        sched.append(dict(K=kw, pad=pad, pool=pool, seg=seg, Lc=Lc, Lout=Lout,
                          tail=Lout * pool - Lc))
        L = Lout
    return sched


# ---------------------------------------------------------------------------
# Fused forward pass: one pallas_call for the whole network
# ---------------------------------------------------------------------------
def fused_forward(x_nchw, net):
    """Single-pallas_call forward of CustomNetwork (inference mode).

    x_nchw: (B, 1, 4, L) f32 (PyTorch layout).  Returns (B, num_units[-1]) f32.
    """
    sched = net["sched"]
    cins, couts = net["cins"], net["couts"]
    fc_dims = net["fc_dims"]
    Lf, Cf = net["Lf"], net["Cf"]
    cw_off, fw_off, vec_off = net["cw_off"], net["fw_off"], net["vec_off"]
    n_conv = len(sched)
    B = x_nchw.shape[0]

    # Batch folding is only valid because conv windows of the Lc kept rows never
    # straddle the inter-batch pad rows (Lc == seg - K + 1 by construction).
    for m in sched:
        assert m["Lc"] == m["seg"] - m["K"] + 1

    # Per-call input glue: NCHW (B,1,4,L) -> channels-last (B,L,4); zero-pad each
    # batch segment for conv 1; fold batch into the matmul M dimension; append
    # K0-1 zero tail rows so every shifted im2col slice is in bounds.
    m0 = sched[0]
    xc = jnp.transpose(x_nchw[:, 0, :, :], (0, 2, 1)).astype(jnp.float32)
    xp = jnp.pad(xc, ((0, 0), (m0["pad"], m0["pad"]), (0, 0)))
    x_slab = jnp.pad(xp.reshape(B * m0["seg"], cins[0]),
                     ((0, m0["K"] - 1), (0, 0)))

    # One shared VMEM scratch for the per-layer im2col matrices + the FC flatten.
    scr_rows = max(B * m["seg"] for m in sched)
    scr_cols = max([m["K"] * c for m, c in zip(sched, cins)] + [Lf * Cf])

    def kernel(x_ref, p_ref, o_ref, scr):
        a = x_ref[...]                                 # (B*seg0 + K0-1, Cin0)
        pooled = None
        for i, m in enumerate(sched):
            K, seg, Lc = m["K"], m["seg"], m["Lc"]
            pool, Lout, tail = m["pool"], m["Lout"], m["tail"]
            cin, cout = cins[i], couts[i]
            M = B * seg

            # Conv as ONE im2col MXU dot (batch folded into M): pack the K
            # shifted views into scratch columns, then a single matmul.
            for k in range(K):
                scr[0:M, k * cin:(k + 1) * cin] = a[k:k + M, :]
            A = scr[0:M, 0:K * cin]                    # (B*seg, K*Cin)
            w = p_ref[cw_off[i]:cw_off[i] + K * cin, 0:cout]
            scale = p_ref[vec_off + 2 * i:vec_off + 2 * i + 1, 0:cout]
            shift = p_ref[vec_off + 2 * i + 1:vec_off + 2 * i + 2, 0:cout]
            y = jnp.dot(A, w, preferred_element_type=jnp.float32)
            y = jnp.maximum(y * scale + shift, 0.0)    # conv bias + BN(eval) + ReLU

            # Ceil-mode max-pool, vectorized over the whole batch.  Zero-padding
            # the tail is exact only because ReLU already ran (values >= 0).
            y3 = y.reshape(B, seg, cout)[:, :Lc, :]    # drop cross-batch rows
            if tail:
                y3 = jnp.concatenate(
                    [y3, jnp.zeros((B, tail, cout), jnp.float32)], axis=1)
            pooled = jnp.max(y3.reshape(B * Lout, pool, cout), axis=1)
            pooled = pooled.reshape(B, Lout, cout)     # (B, Lout, Cout)

            # Build the next layer's padded, batch-folded slab (all in VMEM).
            if i + 1 < n_conv:
                nx = sched[i + 1]
                if nx["pad"]:
                    z = jnp.zeros((B, nx["pad"], cout), jnp.float32)
                    ap = jnp.concatenate([z, pooled, z], axis=1)
                else:
                    ap = pooled
                a = ap.reshape(B * nx["seg"], cout)
                if nx["K"] > 1:
                    a = jnp.concatenate(
                        [a, jnp.zeros((nx["K"] - 1, cout), jnp.float32)], axis=0)

        # FC head: flatten (B, Lf, Cf) -> (B, Lf*Cf) with Lf static stores into
        # scratch (torch's channel-major .view order was folded into the packed
        # FC1 weight at build time), then one batch-folded MXU dot per Linear.
        for l in range(Lf):
            scr[0:B, l * Cf:(l + 1) * Cf] = pooled[:, l:l + 1, :].reshape(B, Cf)
        h = scr[0:B, 0:Lf * Cf]
        for j, (fin, fout) in enumerate(fc_dims):
            w = p_ref[fw_off[j]:fw_off[j] + fin, 0:fout]
            b = p_ref[vec_off + 2 * n_conv + j:vec_off + 2 * n_conv + j + 1, 0:fout]
            h = jnp.maximum(jnp.dot(h, w, preferred_element_type=jnp.float32) + b,
                            0.0)                       # ReLU after EVERY Linear
        o_ref[...] = jax.nn.sigmoid(h)                 # (Dropout = identity)

    vmem = pl.BlockSpec(memory_space=pltpu.MemorySpace.VMEM)
    return pl.pallas_call(
        kernel,
        out_shape=jax.ShapeDtypeStruct((B, fc_dims[-1][1]), jnp.float32),
        in_specs=[vmem, vmem],
        out_specs=vmem,
        scratch_shapes=[pltpu.VMEM((scr_rows, scr_cols), jnp.float32)],
    )(x_slab, net["params"])


# ---------------------------------------------------------------------------
# Deterministic synthetic parameters (CustomNetwork structure, eval mode)
# ---------------------------------------------------------------------------
def build_network(key, *, seq_len, num_channels, kernel_widths, pooling_widths,
                  num_units):
    """Returns (net, conv_params, fc_params, fc_input).

    net          -- everything the fused kernel needs: ONE packed f32 parameter
                    array + static layout metadata (built once; hoisted here
                    per the performance review).
    conv_params / fc_params / fc_input -- torch-layout params for the reference.
    """
    eps = 1e-5
    # Conv2d(1, C1, (4, K)) on a (B,1,4,L) input == 1D conv with 4 input channels.
    chans = [4] + list(num_channels)
    n_conv, n_fc = len(num_channels), len(num_units)
    sched = _conv_schedule(seq_len, kernel_widths, pooling_widths)
    Lf, Cf = sched[-1]["Lout"], num_channels[-1]
    fc_input = Lf * Cf
    units = [fc_input] + list(num_units)

    keys = jax.random.split(key, 6 * n_conv + 2 * n_fc)
    ki = 0
    conv_params = []
    for cin, cout, m in zip(chans[:-1], chans[1:], sched):
        kw = m["K"]
        w_t = 0.1 * jax.random.normal(keys[ki], (cout, cin, kw), jnp.float32); ki += 1
        b_t = 0.1 * jax.random.normal(keys[ki], (cout,), jnp.float32); ki += 1
        gamma = 1.0 + 0.1 * jax.random.normal(keys[ki], (cout,), jnp.float32); ki += 1
        beta = 0.1 * jax.random.normal(keys[ki], (cout,), jnp.float32); ki += 1
        mean = 0.1 * jax.random.normal(keys[ki], (cout,), jnp.float32); ki += 1
        var = 1.0 + 0.5 * jax.random.uniform(keys[ki], (cout,), jnp.float32); ki += 1
        scale = gamma / jnp.sqrt(var + eps)            # BatchNorm2d eval folded
        shift = (b_t - mean) * scale + beta            # conv bias folded in too
        conv_params.append(dict(w=jnp.transpose(w_t, (2, 1, 0)),   # (K, Cin, Cout)
                                scale=scale.reshape(1, cout),
                                shift=shift.reshape(1, cout),
                                pad=m["pad"], pool=m["pool"]))
    fc_params = []
    for uin, uout in zip(units[:-1], units[1:]):
        w_t = 0.1 * jax.random.normal(keys[ki], (uout, uin), jnp.float32); ki += 1
        b_t = 0.1 * jax.random.normal(keys[ki], (uout,), jnp.float32); ki += 1
        fc_params.append(dict(w=jnp.transpose(w_t), b=b_t))        # (in,out),(out,)

    # ---- one-time packing of ALL parameters into a single f32 array ---------
    # One DMA instead of ~14 tiny ones; every section starts on an 8-row-aligned
    # static offset so in-kernel slices are aligned sublane loads.
    W = max(max(num_channels), max(num_units))
    blocks, row = [], 0

    def append(arr2d):
        nonlocal row
        off = row
        blocks.append(jnp.pad(arr2d, ((0, 0), (0, W - arr2d.shape[1]))))
        row += arr2d.shape[0]
        if row % 8:
            blocks.append(jnp.zeros((8 - row % 8, W), jnp.float32))
            row += 8 - row % 8
        return off

    # im2col conv weights: row order k*Cin + c matches the kernel's column order.
    cw_off = tuple(append(p["w"].reshape(-1, p["w"].shape[2])) for p in conv_params)
    # FC1 weight rows regrouped from torch's channel-major flatten order
    # (c*Lf + l) into the kernel's (l*Cf + c) order -- done ONCE here.
    w1, U1 = fc_params[0]["w"], units[1]
    w1_r = jnp.transpose(w1.reshape(Cf, Lf, U1), (1, 0, 2)).reshape(Lf * Cf, U1)
    fw_off = tuple([append(w1_r)] + [append(p["w"]) for p in fc_params[1:]])
    # All tiny per-channel vectors as rows of the same packed array.
    vec_rows = []
    for p in conv_params:
        vec_rows += [p["scale"], p["shift"]]
    for p in fc_params:
        vec_rows.append(p["b"].reshape(1, -1))
    vec_off = append(jnp.concatenate(
        [jnp.pad(v, ((0, 0), (0, W - v.shape[1]))) for v in vec_rows], axis=0))
    params = jnp.concatenate(blocks, axis=0)

    net = dict(params=params, sched=sched, cins=chans[:-1], couts=chans[1:],
               Lf=Lf, Cf=Cf, fc_dims=list(zip(units[:-1], units[1:])),
               cw_off=cw_off, fw_off=fw_off, vec_off=vec_off)
    return net, conv_params, fc_params, fc_input


# ---------------------------------------------------------------------------
# Plain-jnp reference with identical (torch) semantics, for validation
# ---------------------------------------------------------------------------
def reference_forward(x_nchw, conv_params, fc_params, fc_input):
    B = x_nchw.shape[0]
    h = jnp.transpose(x_nchw[:, 0, :, :], (0, 2, 1)).astype(jnp.float32)
    for p in conv_params:
        hp = jnp.pad(h, ((0, 0), (p["pad"], p["pad"]), (0, 0)))
        K, _, Cout = p["w"].shape
        L = hp.shape[1] - K + 1
        acc = jnp.zeros((B, L, Cout), jnp.float32)
        for k in range(K):
            acc = acc + jnp.einsum("blc,cd->bld", hp[:, k:k + L, :], p["w"][k])
        y = jnp.maximum(acc * p["scale"] + p["shift"], 0.0)
        pool = p["pool"]
        Lout = -(-L // pool)
        tail = Lout * pool - L
        if tail:
            y = jnp.pad(y, ((0, 0), (0, tail), (0, 0)))
        h = y.reshape(B, Lout, pool, Cout).max(axis=2)
    h = jnp.transpose(h, (0, 2, 1)).reshape(B, fc_input)     # torch channel-major view
    for p in fc_params:
        h = jnp.maximum(h @ p["w"] + p["b"], 0.0)
    return jax.nn.sigmoid(h)


if __name__ == "__main__":
    # Small configuration consistent with CustomNetwork:
    #   seq_len=32, num_channels=[8,8,8], kernel_widths=[5,3,3],
    #   pooling_widths=[2,2,2], num_units=[16,4]  -> fc_input = 4*8 = 32
    seq_len = 32
    num_channels = [8, 8, 8]
    kernel_widths = [5, 3, 3]
    pooling_widths = [2, 2, 2]
    num_units = [16, 4]
    batch = 2

    key = jax.random.PRNGKey(0)
    k_params, k_x = jax.random.split(key)
    net, conv_params, fc_params, fc_input = build_network(
        k_params, seq_len=seq_len, num_channels=num_channels,
        kernel_widths=kernel_widths, pooling_widths=pooling_widths,
        num_units=num_units)

    x = jax.random.normal(k_x, (batch, 1, 4, seq_len), jnp.float32)

    fwd = jax.jit(lambda inp: fused_forward(inp, net))
    out = jax.block_until_ready(fwd(x))
    assert out.shape == (batch, num_units[-1]), out.shape

    ref = jax.block_until_ready(
        reference_forward(x, conv_params, fc_params, fc_input))
    assert jnp.allclose(out, ref, atol=1e-3, rtol=1e-2), (out, ref)

    print("KERNEL_OK")
</pallas_src>

<mosaic_0001>
module attributes {stable_mosaic.version = 11 : i64} {
  func.func @kernel(%arg0: memref<76x4xf32, #tpu.memory_space<vmem>>, %arg1: memref<128x16xf32, #tpu.memory_space<vmem>>, %arg2: memref<2x4xf32, #tpu.memory_space<vmem>>, %arg3: memref<72x32xf32, #tpu.memory_space<vmem>>) attributes {dimension_semantics = [], scalar_prefetch = 0 : i64, scratch_operands = 1 : i64, tpu.core_type = #tpu.core_type<tc>} {
    %c0 = arith.constant 0 : index
    %c0_0 = arith.constant 0 : index
    %0 = vector.load %arg0[%c0, %c0_0] : memref<76x4xf32, #tpu.memory_space<vmem>>, vector<76x4xf32>
    %1 = vector.extract_strided_slice %0 {offsets = [0, 0], sizes = [72, 4], strides = [1, 1]} : vector<76x4xf32> to vector<72x4xf32>
    %c0_1 = arith.constant 0 : index
    %c0_2 = arith.constant 0 : index
    %2 = vector.load %arg3[%c0_1, %c0_2] : memref<72x32xf32, #tpu.memory_space<vmem>>, vector<72x4xf32>
    tpu.vector_store %arg3[%c0_1, %c0_2], %1 {strides = array<i32>} : memref<72x32xf32, #tpu.memory_space<vmem>>, vector<72x4xf32>,
    %3 = vector.extract_strided_slice %0 {offsets = [1, 0], sizes = [72, 4], strides = [1, 1]} : vector<76x4xf32> to vector<72x4xf32>
    %c0_3 = arith.constant 0 : index
    %c4 = arith.constant 4 : index
    %4 = vector.load %arg3[%c0_3, %c4] : memref<72x32xf32, #tpu.memory_space<vmem>>, vector<72x4xf32>
    tpu.vector_store %arg3[%c0_3, %c4], %3 {strides = array<i32>} : memref<72x32xf32, #tpu.memory_space<vmem>>, vector<72x4xf32>,
    %5 = vector.extract_strided_slice %0 {offsets = [2, 0], sizes = [72, 4], strides = [1, 1]} : vector<76x4xf32> to vector<72x4xf32>
    %c0_4 = arith.constant 0 : index
    %c8 = arith.constant 8 : index
    %6 = vector.load %arg3[%c0_4, %c8] : memref<72x32xf32, #tpu.memory_space<vmem>>, vector<72x4xf32>
    tpu.vector_store %arg3[%c0_4, %c8], %5 {strides = array<i32>} : memref<72x32xf32, #tpu.memory_space<vmem>>, vector<72x4xf32>,
    %7 = vector.extract_strided_slice %0 {offsets = [3, 0], sizes = [72, 4], strides = [1, 1]} : vector<76x4xf32> to vector<72x4xf32>
    %c0_5 = arith.constant 0 : index
    %c12 = arith.constant 12 : index
    %8 = vector.load %arg3[%c0_5, %c12] : memref<72x32xf32, #tpu.memory_space<vmem>>, vector<72x4xf32>
    tpu.vector_store %arg3[%c0_5, %c12], %7 {strides = array<i32>} : memref<72x32xf32, #tpu.memory_space<vmem>>, vector<72x4xf32>,
    %9 = vector.extract_strided_slice %0 {offsets = [4, 0], sizes = [72, 4], strides = [1, 1]} : vector<76x4xf32> to vector<72x4xf32>
    %c0_6 = arith.constant 0 : index
    %c16 = arith.constant 16 : index
    %10 = vector.load %arg3[%c0_6, %c16] : memref<72x32xf32, #tpu.memory_space<vmem>>, vector<72x4xf32>
    tpu.vector_store %arg3[%c0_6, %c16], %9 {strides = array<i32>} : memref<72x32xf32, #tpu.memory_space<vmem>>, vector<72x4xf32>,
    %c0_7 = arith.constant 0 : index
    %c0_8 = arith.constant 0 : index
    %11 = vector.load %arg3[%c0_7, %c0_8] : memref<72x32xf32, #tpu.memory_space<vmem>>, vector<72x20xf32>
    %c0_9 = arith.constant 0 : index
    %c0_10 = arith.constant 0 : index
    %12 = vector.load %arg1[%c0_9, %c0_10] : memref<128x16xf32, #tpu.memory_space<vmem>>, vector<20x8xf32>
    %c120 = arith.constant 120 : index
    %c0_11 = arith.constant 0 : index
    %13 = vector.load %arg1[%c120, %c0_11] : memref<128x16xf32, #tpu.memory_space<vmem>>, vector<1x8xf32>
    %c121 = arith.constant 121 : index
    %c0_12 = arith.constant 0 : index
    %14 = vector.load %arg1[%c121, %c0_12] : memref<128x16xf32, #tpu.memory_space<vmem>>, vector<1x8xf32>
    %cst = arith.constant dense<0.000000e+00> : vector<72x8xf32>
    %15 = tpu.matmul %11, %12, %cst {dimension_numbers = #tpu.dot_dimension_numbers<[1], [0], [0], [1], [0, 0, 1, 1], [], []>} : vector<72x20xf32>, vector<20x8xf32>, vector<72x8xf32> -> vector<72x8xf32>
    %16 = vector.broadcast %13 : vector<1x8xf32> to vector<72x8xf32>
    %17 = arith.mulf %15, %16 : vector<72x8xf32>
    %18 = vector.broadcast %14 : vector<1x8xf32> to vector<72x8xf32>
    %19 = arith.addf %17, %18 : vector<72x8xf32>
    %cst_13 = arith.constant 0.000000e+00 : f32
    %20 = vector.broadcast %cst_13 : f32 to vector<72x8xf32>
    %21 = arith.maximumf %19, %20 : vector<72x8xf32>
    %22 = vector.shape_cast %21 : vector<72x8xf32> to vector<2x36x8xf32>
    %23 = vector.extract_strided_slice %22 {offsets = [0, 0, 0], sizes = [2, 32, 8], strides = [1, 1, 1]} : vector<2x36x8xf32> to vector<2x32x8xf32>
    %24 = vector.shape_cast %23 : vector<2x32x8xf32> to vector<32x2x8xf32>
    %cst_14 = arith.constant dense<0xFF800000> : vector<32x8xf32>
    %25 = vector.multi_reduction <maximumf>, %24, %cst_14 [1] : vector<32x2x8xf32> to vector<32x8xf32>
    %26 = vector.shape_cast %25 : vector<32x8xf32> to vector<2x16x8xf32>
    %cst_15 = arith.constant 0.000000e+00 : f32
    %27 = vector.broadcast %cst_15 : f32 to vector<2x1x8xf32>
    %28 = tpu.concatenate %27, %26, %27 in 1 : vector<2x1x8xf32>, vector<2x16x8xf32>, vector<2x1x8xf32> -> vector<2x18x8xf32>
    %29 = vector.shape_cast %28 : vector<2x18x8xf32> to vector<36x8xf32>
    %cst_16 = arith.constant 0.000000e+00 : f32
    %30 = vector.broadcast %cst_16 : f32 to vector<2x8xf32>
    %31 = tpu.concatenate %29, %30 in 0 : vector<36x8xf32>, vector<2x8xf32> -> vector<38x8xf32>
    %32 = vector.extract_strided_slice %31 {offsets = [0, 0], sizes = [36, 8], strides = [1, 1]} : vector<38x8xf32> to vector<36x8xf32>
    %c0_17 = arith.constant 0 : index
    %c0_18 = arith.constant 0 : index
    %33 = vector.load %arg3[%c0_17, %c0_18] : memref<72x32xf32, #tpu.memory_space<vmem>>, vector<36x8xf32>
    tpu.vector_store %arg3[%c0_17, %c0_18], %32 {strides = array<i32>} : memref<72x32xf32, #tpu.memory_space<vmem>>, vector<36x8xf32>,
    %34 = vector.extract_strided_slice %31 {offsets = [1, 0], sizes = [36, 8], strides = [1, 1]} : vector<38x8xf32> to vector<36x8xf32>
    %c0_19 = arith.constant 0 : index
    %c8_20 = arith.constant 8 : index
    %35 = vector.load %arg3[%c0_19, %c8_20] : memref<72x32xf32, #tpu.memory_space<vmem>>, vector<36x8xf32>
    tpu.vector_store %arg3[%c0_19, %c8_20], %34 {strides = array<i32>} : memref<72x32xf32, #tpu.memory_space<vmem>>, vector<36x8xf32>,
    %36 = vector.extract_strided_slice %31 {offsets = [2, 0], sizes = [36, 8], strides = [1, 1]} : vector<38x8xf32> to vector<36x8xf32>
    %c0_21 = arith.constant 0 : index
    %c16_22 = arith.constant 16 : index
    %37 = vector.load %arg3[%c0_21, %c16_22] : memref<72x32xf32, #tpu.memory_space<vmem>>, vector<36x8xf32>
    tpu.vector_store %arg3[%c0_21, %c16_22], %36 {strides = array<i32>} : memref<72x32xf32, #tpu.memory_space<vmem>>, vector<36x8xf32>,
    %c0_23 = arith.constant 0 : index
    %c0_24 = arith.constant 0 : index
    %38 = vector.load %arg3[%c0_23, %c0_24] : memref<72x32xf32, #tpu.memory_space<vmem>>, vector<36x24xf32>
    %c24 = arith.constant 24 : index
    %c0_25 = arith.constant 0 : index
    %39 = vector.load %arg1[%c24, %c0_25] : memref<128x16xf32, #tpu.memory_space<vmem>>, vector<24x8xf32>
    %c122 = arith.constant 122 : index
    %c0_26 = arith.constant 0 : index
    %40 = vector.load %arg1[%c122, %c0_26] : memref<128x16xf32, #tpu.memory_space<vmem>>, vector<1x8xf32>
    %c123 = arith.constant 123 : index
    %c0_27 = arith.constant 0 : index
    %41 = vector.load %arg1[%c123, %c0_27] : memref<128x16xf32, #tpu.memory_space<vmem>>, vector<1x8xf32>
    %cst_28 = arith.constant dense<0.000000e+00> : vector<36x8xf32>
    %42 = tpu.matmul %38, %39, %cst_28 {dimension_numbers = #tpu.dot_dimension_numbers<[1], [0], [0], [1], [0, 0, 1, 1], [], []>} : vector<36x24xf32>, vector<24x8xf32>, vector<36x8xf32> -> vector<36x8xf32>
    %43 = vector.broadcast %40 : vector<1x8xf32> to vector<36x8xf32>
    %44 = arith.mulf %42, %43 : vector<36x8xf32>
    %45 = vector.broadcast %41 : vector<1x8xf32> to vector<36x8xf32>
    %46 = arith.addf %44, %45 : vector<36x8xf32>
    %cst_29 = arith.constant 0.000000e+00 : f32
    %47 = vector.broadcast %cst_29 : f32 to vector<36x8xf32>
    %48 = arith.maximumf %46, %47 : vector<36x8xf32>
    %49 = vector.shape_cast %48 : vector<36x8xf32> to vector<2x18x8xf32>
    %50 = vector.extract_strided_slice %49 {offsets = [0, 0, 0], sizes = [2, 16, 8], strides = [1, 1, 1]} : vector<2x18x8xf32> to vector<2x16x8xf32>
    %51 = vector.shape_cast %50 : vector<2x16x8xf32> to vector<16x2x8xf32>
    %cst_30 = arith.constant dense<0xFF800000> : vector<16x8xf32>
    %52 = vector.multi_reduction <maximumf>, %51, %cst_30 [1] : vector<16x2x8xf32> to vector<16x8xf32>
    %53 = vector.shape_cast %52 : vector<16x8xf32> to vector<2x8x8xf32>
    %cst_31 = arith.constant 0.000000e+00 : f32
    %54 = vector.broadcast %cst_31 : f32 to vector<2x1x8xf32>
    %55 = tpu.concatenate %54, %53, %54 in 1 : vector<2x1x8xf32>, vector<2x8x8xf32>, vector<2x1x8xf32> -> vector<2x10x8xf32>
    %56 = vector.shape_cast %55 : vector<2x10x8xf32> to vector<20x8xf32>
    %cst_32 = arith.constant 0.000000e+00 : f32
    %57 = vector.broadcast %cst_32 : f32 to vector<2x8xf32>
    %58 = tpu.concatenate %56, %57 in 0 : vector<20x8xf32>, vector<2x8xf32> -> vector<22x8xf32>
    %59 = vector.extract_strided_slice %58 {offsets = [0, 0], sizes = [20, 8], strides = [1, 1]} : vector<22x8xf32> to vector<20x8xf32>
    %c0_33 = arith.constant 0 : index
    %c0_34 = arith.constant 0 : index
    %60 = vector.load %arg3[%c0_33, %c0_34] : memref<72x32xf32, #tpu.memory_space<vmem>>, vector<20x8xf32>
    tpu.vector_store %arg3[%c0_33, %c0_34], %59 {strides = array<i32>} : memref<72x32xf32, #tpu.memory_space<vmem>>, vector<20x8xf32>,
    %61 = vector.extract_strided_slice %58 {offsets = [1, 0], sizes = [20, 8], strides = [1, 1]} : vector<22x8xf32> to vector<20x8xf32>
    %c0_35 = arith.constant 0 : index
    %c8_36 = arith.constant 8 : index
    %62 = vector.load %arg3[%c0_35, %c8_36] : memref<72x32xf32, #tpu.memory_space<vmem>>, vector<20x8xf32>
    tpu.vector_store %arg3[%c0_35, %c8_36], %61 {strides = array<i32>} : memref<72x32xf32, #tpu.memory_space<vmem>>, vector<20x8xf32>,
    %63 = vector.extract_strided_slice %58 {offsets = [2, 0], sizes = [20, 8], strides = [1, 1]} : vector<22x8xf32> to vector<20x8xf32>
    %c0_37 = arith.constant 0 : index
    %c16_38 = arith.constant 16 : index
    %64 = vector.load %arg3[%c0_37, %c16_38] : memref<72x32xf32, #tpu.memory_space<vmem>>, vector<20x8xf32>
    tpu.vector_store %arg3[%c0_37, %c16_38], %63 {strides = array<i32>} : memref<72x32xf32, #tpu.memory_space<vmem>>, vector<20x8xf32>,
    %c0_39 = arith.constant 0 : index
    %c0_40 = arith.constant 0 : index
    %65 = vector.load %arg3[%c0_39, %c0_40] : memref<72x32xf32, #tpu.memory_space<vmem>>, vector<20x24xf32>
    %c48 = arith.constant 48 : index
    %c0_41 = arith.constant 0 : index
    %66 = vector.load %arg1[%c48, %c0_41] : memref<128x16xf32, #tpu.memory_space<vmem>>, vector<24x8xf32>
    %c124 = arith.constant 124 : index
    %c0_42 = arith.constant 0 : index
    %67 = vector.load %arg1[%c124, %c0_42] : memref<128x16xf32, #tpu.memory_space<vmem>>, vector<1x8xf32>
    %c125 = arith.constant 125 : index
    %c0_43 = arith.constant 0 : index
    %68 = vector.load %arg1[%c125, %c0_43] : memref<128x16xf32, #tpu.memory_space<vmem>>, vector<1x8xf32>
    %cst_44 = arith.constant dense<0.000000e+00> : vector<20x8xf32>
    %69 = tpu.matmul %65, %66, %cst_44 {dimension_numbers = #tpu.dot_dimension_numbers<[1], [0], [0], [1], [0, 0, 1, 1], [], []>} : vector<20x24xf32>, vector<24x8xf32>, vector<20x8xf32> -> vector<20x8xf32>
    %70 = vector.broadcast %67 : vector<1x8xf32> to vector<20x8xf32>
    %71 = arith.mulf %69, %70 : vector<20x8xf32>
    %72 = vector.broadcast %68 : vector<1x8xf32> to vector<20x8xf32>
    %73 = arith.addf %71, %72 : vector<20x8xf32>
    %cst_45 = arith.constant 0.000000e+00 : f32
    %74 = vector.broadcast %cst_45 : f32 to vector<20x8xf32>
    %75 = arith.maximumf %73, %74 : vector<20x8xf32>
    %76 = vector.shape_cast %75 : vector<20x8xf32> to vector<2x10x8xf32>
    %77 = vector.extract_strided_slice %76 {offsets = [0, 0, 0], sizes = [2, 8, 8], strides = [1, 1, 1]} : vector<2x10x8xf32> to vector<2x8x8xf32>
    %78 = vector.shape_cast %77 : vector<2x8x8xf32> to vector<8x2x8xf32>
    %cst_46 = arith.constant dense<0xFF800000> : vector<8x8xf32>
    %79 = vector.multi_reduction <maximumf>, %78, %cst_46 [1] : vector<8x2x8xf32> to vector<8x8xf32>
    %80 = vector.shape_cast %79 : vector<8x8xf32> to vector<2x4x8xf32>
    %81 = vector.extract_strided_slice %80 {offsets = [0, 0, 0], sizes = [2, 1, 8], strides = [1, 1, 1]} : vector<2x4x8xf32> to vector<2x1x8xf32>
    %82 = vector.shape_cast %81 : vector<2x1x8xf32> to vector<2x8xf32>
    %c0_47 = arith.constant 0 : index
    %c0_48 = arith.constant 0 : index
    %83 = vector.load %arg3[%c0_47, %c0_48] : memref<72x32xf32, #tpu.memory_space<vmem>>, vector<2x8xf32>
    tpu.vector_store %arg3[%c0_47, %c0_48], %82 {strides = array<i32>} : memref<72x32xf32, #tpu.memory_space<vmem>>, vector<2x8xf32>,
    %84 = vector.extract_strided_slice %80 {offsets = [0, 1, 0], sizes = [2, 1, 8], strides = [1, 1, 1]} : vector<2x4x8xf32> to vector<2x1x8xf32>
    %85 = vector.shape_cast %84 : vector<2x1x8xf32> to vector<2x8xf32>
    %c0_49 = arith.constant 0 : index
    %c8_50 = arith.constant 8 : index
    %86 = vector.load %arg3[%c0_49, %c8_50] : memref<72x32xf32, #tpu.memory_space<vmem>>, vector<2x8xf32>
    tpu.vector_store %arg3[%c0_49, %c8_50], %85 {strides = array<i32>} : memref<72x32xf32, #tpu.memory_space<vmem>>, vector<2x8xf32>,
    %87 = vector.extract_strided_slice %80 {offsets = [0, 2, 0], sizes = [2, 1, 8], strides = [1, 1, 1]} : vector<2x4x8xf32> to vector<2x1x8xf32>
    %88 = vector.shape_cast %87 : vector<2x1x8xf32> to vector<2x8xf32>
    %c0_51 = arith.constant 0 : index
    %c16_52 = arith.constant 16 : index
    %89 = vector.load %arg3[%c0_51, %c16_52] : memref<72x32xf32, #tpu.memory_space<vmem>>, vector<2x8xf32>
    tpu.vector_store %arg3[%c0_51, %c16_52], %88 {strides = array<i32>} : memref<72x32xf32, #tpu.memory_space<vmem>>, vector<2x8xf32>,
    %90 = vector.extract_strided_slice %80 {offsets = [0, 3, 0], sizes = [2, 1, 8], strides = [1, 1, 1]} : vector<2x4x8xf32> to vector<2x1x8xf32>
    %91 = vector.shape_cast %90 : vector<2x1x8xf32> to vector<2x8xf32>
    %c0_53 = arith.constant 0 : index
    %c24_54 = arith.constant 24 : index
    %92 = vector.load %arg3[%c0_53, %c24_54] : memref<72x32xf32, #tpu.memory_space<vmem>>, vector<2x8xf32>
    tpu.vector_store %arg3[%c0_53, %c24_54], %91 {strides = array<i32>} : memref<72x32xf32, #tpu.memory_space<vmem>>, vector<2x8xf32>,
    %c0_55 = arith.constant 0 : index
    %c0_56 = arith.constant 0 : index
    %93 = vector.load %arg3[%c0_55, %c0_56] : memref<72x32xf32, #tpu.memory_space<vmem>>, vector<2x32xf32>
    %c72 = arith.constant 72 : index
    %c0_57 = arith.constant 0 : index
    %94 = vector.load %arg1[%c72, %c0_57] : memref<128x16xf32, #tpu.memory_space<vmem>>, vector<32x16xf32>
    %c126 = arith.constant 126 : index
    %c0_58 = arith.constant 0 : index
    %95 = vector.load %arg1[%c126, %c0_58] : memref<128x16xf32, #tpu.memory_space<vmem>>, vector<1x16xf32>
    %cst_59 = arith.constant dense<0.000000e+00> : vector<2x16xf32>
    %96 = tpu.matmul %93, %94, %cst_59 {dimension_numbers = #tpu.dot_dimension_numbers<[1], [0], [0], [1], [0, 0, 1, 1], [], []>} : vector<2x32xf32>, vector<32x16xf32>, vector<2x16xf32> -> vector<2x16xf32>
    %97 = vector.broadcast %95 : vector<1x16xf32> to vector<2x16xf32>
    %98 = arith.addf %96, %97 : vector<2x16xf32>
    %cst_60 = arith.constant 0.000000e+00 : f32
    %99 = vector.broadcast %cst_60 : f32 to vector<2x16xf32>
    %100 = arith.maximumf %98, %99 : vector<2x16xf32>
    %c104 = arith.constant 104 : index
    %c0_61 = arith.constant 0 : index
    %101 = vector.load %arg1[%c104, %c0_61] : memref<128x16xf32, #tpu.memory_space<vmem>>, vector<16x4xf32>
    %c127 = arith.constant 127 : index
    %c0_62 = arith.constant 0 : index
    %102 = vector.load %arg1[%c127, %c0_62] : memref<128x16xf32, #tpu.memory_space<vmem>>, vector<1x4xf32>
    %cst_63 = arith.constant dense<0.000000e+00> : vector<2x4xf32>
    %103 = tpu.matmul %100, %101, %cst_63 {dimension_numbers = #tpu.dot_dimension_numbers<[1], [0], [0], [1], [0, 0, 1, 1], [], []>} : vector<2x16xf32>, vector<16x4xf32>, vector<2x4xf32> -> vector<2x4xf32>
    %104 = vector.broadcast %102 : vector<1x4xf32> to vector<2x4xf32>
    %105 = arith.addf %103, %104 : vector<2x4xf32>
    %cst_64 = arith.constant 0.000000e+00 : f32
    %106 = vector.broadcast %cst_64 : f32 to vector<2x4xf32>
    %107 = arith.maximumf %105, %106 : vector<2x4xf32>
    %108 = arith.negf %107 : vector<2x4xf32>
    %109 = math.exp %108 : vector<2x4xf32>
    %cst_65 = arith.constant 1.000000e+00 : f32
    %110 = vector.broadcast %cst_65 : f32 to vector<2x4xf32>
    %111 = arith.addf %110, %109 : vector<2x4xf32>
    %112 = arith.divf %110, %111 : vector<2x4xf32>
    %c0_66 = arith.constant 0 : index
    %c0_67 = arith.constant 0 : index
    %113 = vector.load %arg2[%c0_66, %c0_67] : memref<2x4xf32, #tpu.memory_space<vmem>>, vector<2x4xf32>
    tpu.vector_store %arg2[%c0_66, %c0_67], %112 {strides = array<i32>} : memref<2x4xf32, #tpu.memory_space<vmem>>, vector<2x4xf32>,
    return
  }
}

</mosaic_0001>

<bundles_post_ra>
// kernel: _lambda_.1
= control target key start
LH: loop header
LB: loop body
LE: loop exit
PB: predicated region body
PF: predicated region fallthrough
CT: control target
= control target key end

     0   :  { %vm22_vm0 = vcmask 31744   ;;  %s2237_s15 = smov 8   ;;  %s2238_s16 = smov 4   ;;  %vm256_vm1 = vcmask 1043456   ;;  %s2826_s0 = inlined_call_operand.vmem [shape: f32[76,4], index: 0, kind: input, shape index: {}]   ;;  %s2827_s1 = inlined_call_operand.vmem [shape: f32[128,16], index: 1, kind: input, shape index: {}]   ;;  %s2828_s2 = inlined_call_operand.hbm [shape: f32[2,4], index: 2, kind: output, shape index: {}]  }
   0x1   :  { %v12_v0 = vld [vmem:[%s2826_s0] sm:$0xff]  ;;  %v13_v1 = vld [vmem:[%s2826_s0 + $0x8] sm:$0xff]  ;;  %v14_v2 = vld [vmem:[%s2826_s0 + $0x10] sm:$0xff] }
   0x2   :  { %85 = vrot.lane.b32.xlu1 %v12_v0, %s2237_s15  ;;  %42 = vrot.lane.b32.xlu0 %v12_v0, %s2238_s16  ;;  %v15_v3 = vld [vmem:[%s2826_s0 + $0x18] sm:$0xff]  ;;  %v16_v4 = vld [vmem:[%s2826_s0 + $0x20] sm:$0xff]  ;;  %23 = vst.msk [vmem:[#allocation2] sm:$0xff] %vm22_vm0, %v12_v0  ;;  %24 = vst.msk [vmem:[#allocation2 + $0x8] sm:$0xff] %vm22_vm0, %v13_v1 }
   0x3   :  { %25 = vst.msk [vmem:[#allocation2 + $0x10] sm:$0xff] %vm22_vm0, %v14_v2  ;;  %v17_v5 = vld [vmem:[%s2826_s0 + $0x28] sm:$0xff]  ;;  %v18_v6 = vld [vmem:[%s2826_s0 + $0x30] sm:$0xff]  ;;  %v19_v7 = vld [vmem:[%s2826_s0 + $0x38] sm:$0xff] }
   0x4   :  { %26 = vst.msk [vmem:[#allocation2 + $0x18] sm:$0xff] %vm22_vm0, %v15_v3  ;;  %27 = vst.msk [vmem:[#allocation2 + $0x20] sm:$0xff] %vm22_vm0, %v16_v4  ;;  %v20_v8 = vld [vmem:[%s2826_s0 + $0x40] sm:$0xff]  ;;  %v225_v9 = vld [vmem:[%s2827_s1 + $0x10] sm:$0xf] }
   0x5   :  { %28 = vst.msk [vmem:[#allocation2 + $0x28] sm:$0xff] %vm22_vm0, %v17_v5  ;;  %29 = vst.msk [vmem:[#allocation2 + $0x30] sm:$0xff] %vm22_vm0, %v18_v6 }
   0x6   :  { %30 = vst.msk [vmem:[#allocation2 + $0x38] sm:$0xff] %vm22_vm0, %v19_v7  ;;  %31 = vst.msk [vmem:[#allocation2 + $0x40] sm:$0xff] %vm22_vm0, %v20_v8  ;;  %87 = vrot.lane.b32.xlu1 %v13_v1, %s2237_s15  ;;  %44 = vrot.lane.b32.xlu0 %v13_v1, %s2238_s16 }
   0x7   :  { %7 = vsyncpa [#allocation4], 0  ;;  %v2239_v10 = vmov 0.0   ;;  %vm2240_vm2 = vmmov 0   ;;  %v224_v11 = vld [vmem:[%s2827_s1 + $0x8] sm:$0xff]  ;;  %s2241_s5 = smov 12  }
   0x8   :  { %2115 = vmatprep.subr.mxu0 %v2239_v10  ;;  %2121 = vmatprep.mubr.msk.f32.mxu0 %vm2240_vm2, %v2239_v10  ;;  %v223_v12 = vld [vmem:[%s2827_s1] sm:$0xff]  ;;  %s2242_s8 = smov 16   ;;  %v21_v13 = vld [vmem:[%s2826_s0 + $0x48] sm:$0xf]  ;;  %vm72_vm3 = vcmask 64545   ;;  %vm115_vm4 = vcmask 97346  }
   0x9   :  { %2116 = vmatpush3.msk.msra.mxu0 %vm256_vm1, %v225_v9  ;;  %2148 = vmatprep.subr.mxu1 %v2239_v10  ;;  %vm74_vm5 = vcmask 64544   ;;  %vm117_vm6 = vcmask 97344   ;;  %vm160_vm7 = vcmask 130144   ;;  %vm158_vm8 = vcmask 130147   ;;  %s2244_s20 = smov 24   ;;  %s2245_s23 = smov [#allocation3]  }
   0xa   :  { %2117 = vmatprep.subr.mxu0 %v2239_v10  ;;  %2154 = vmatprep.mubr.msk.f32.mxu1 %vm2240_vm2, %v2239_v10  ;;  %vm203_vm9 = vcmask 162944   ;;  %vm201_vm10 = vcmask 162948   ;;  %vm228_vm11 = vcmask 162816   ;;  %vm83_vm12 = vcmask 57376   ;;  %s2044_s24 = sshll.u32 %s2245_s23, 4  ;;  %s2045_s24 = int_to_ptr.vmem [resolvable:$true] %s2044_s24 }
   0xb   :  { %130 = vrot.lane.b32.xlu1 %v13_v1, %s2241_s5  ;;  %128 = vrot.lane.b32.xlu0 %v12_v0, %s2241_s5  ;;  %vm126_vm13 = vcmask 91200   ;;  %vm169_vm14 = vcmask 125024   ;;  %vm212_vm15 = vcmask 158848   ;;  %v2243_v63 = vmov 1983009808   ;;  %s2215_s25 = scalar_lea.vmem %s2045_s24, 32  ;;  %p2220_p1 = scmp.lt.s32.totalorder %s2045_s24, %s2045_s24 }
   0xc   :  { %2118 = vmatpush3.msra.mxu0 %v224_v11  ;;  %vm582_vm0 = vcmask 58368   ;;  %p2216_p0 = scmp.ne.s32.totalorder %s2045_s24, %s2215_s25  ;;  %p2221_p2 = scmp.lt.s32.totalorder %s2215_s25, %s2215_s25 }
   0xd   :  { %2119 = vmatprep.subr.mxu0 %v2239_v10 }
   0xe   :  { %2120 = vmatpush3.msra.mxu0 %v223_v12  ;;  %p2222_p3 = por %p2221_p2, %p2220_p1 }
   0xf   :  { %173 = vrot.lane.b32.xlu1 %v13_v1, %s2242_s8  ;;  %171 = vrot.lane.b32.xlu0 %v12_v0, %s2242_s8  ;;  %v423_v0 = vunpack.c.l.s4 %v2243_v63  ;;  %v425_v1 = vlaneseq }
  0x10   :  { %2195 = vmatprep.subr.mxu0 %v2239_v10  ;;  %p2223_p4 = pnand %p2222_p3, %p2216_p0 }
  0x13   :  { %46 = vrot.lane.b32.xlu0 %v14_v2, %s2238_s16  ;;  %89 = vrot.lane.b32.xlu1 %v14_v2, %s2237_s15 }
  0x17   :  { %132 = vrot.lane.b32.xlu0 %v14_v2, %s2241_s5  ;;  %175 = vrot.lane.b32.xlu1 %v14_v2, %s2242_s8  ;;  %v2421_v2 = vld [vmem:[%s2827_s1 + $0x78] ss:$0 sm:$0xff] }
  0x1b   :  { %48 = vrot.lane.b32.xlu0 %v15_v3, %s2238_s16  ;;  %91 = vrot.lane.b32.xlu1 %v15_v3, %s2237_s15 }
  0x1f   :  { %134 = vrot.lane.b32.xlu0 %v15_v3, %s2241_s5  ;;  %177 = vrot.lane.b32.xlu1 %v15_v3, %s2242_s8  ;;  %v424_v3 = vunpack.c.0.s8 %v423_v0 }
  0x23   :  { %50 = vrot.lane.b32.xlu0 %v16_v4, %s2238_s16  ;;  %93 = vrot.lane.b32.xlu1 %v16_v4, %s2237_s15 }
  0x27   :  { %136 = vrot.lane.b32.xlu0 %v16_v4, %s2241_s5  ;;  %179 = vrot.lane.b32.xlu1 %v16_v4, %s2242_s8  ;;  %v426_v4 = vshrl.u32 %v425_v1, 7 }
  0x29   :  { %v2430_v11 = vsub.s32 %v424_v3, %v426_v4 }
  0x2b   :  { %52 = vrot.lane.b32.xlu0 %v17_v5, %s2238_s16  ;;  %95 = vrot.lane.b32.xlu1 %v17_v5, %s2237_s15 }
  0x2f   :  { %138 = vrot.lane.b32.xlu0 %v17_v5, %s2241_s5  ;;  %181 = vrot.lane.b32.xlu1 %v17_v5, %s2242_s8  ;;  %v2426_v5 = vld [vmem:[%s2827_s1 + $0x79] ss:$0 sm:$0xff] }
  0x33   :  { %54 = vrot.lane.b32.xlu0 %v18_v6, %s2238_s16  ;;  %97 = vrot.lane.b32.xlu1 %v18_v6, %s2237_s15 }
  0x37   :  { %140 = vrot.lane.b32.xlu0 %v18_v6, %s2241_s5  ;;  %183 = vrot.lane.b32.xlu1 %v18_v6, %s2242_s8 }
  0x3b   :  { %56 = vrot.lane.b32.xlu0 %v19_v7, %s2238_s16  ;;  %99 = vrot.lane.b32.xlu1 %v19_v7, %s2237_s15 }
  0x3f   :  { %142 = vrot.lane.b32.xlu0 %v19_v7, %s2241_s5  ;;  %185 = vrot.lane.b32.xlu1 %v19_v7, %s2242_s8 }
  0x43   :  { %58 = vrot.lane.b32.xlu0 %v20_v8, %s2238_s16  ;;  %101 = vrot.lane.b32.xlu1 %v20_v8, %s2237_s15 }
  0x47   :  { %144 = vrot.lane.b32.xlu0 %v20_v8, %s2241_s5  ;;  %187 = vrot.lane.b32.xlu1 %v20_v8, %s2242_s8 }
  0x4b   :  { %60 = vrot.lane.b32.xlu0 %v21_v13, %s2238_s16  ;;  %103 = vrot.lane.b32.xlu1 %v21_v13, %s2237_s15 }
  0x4f   :  { %146 = vrot.lane.b32.xlu0 %v21_v13, %s2241_s5  ;;  %189 = vrot.lane.b32.xlu1 %v21_v13, %s2242_s8 }
  0x74   :  { %v86_v14 = vpop.permute.xlu1 %85  ;;  %v43_v15 = vpop.permute.xlu0 %42 }
  0x75   :  { %73 = vst.msk [vmem:[#allocation2 - $0x1] sm:$0xfe] %vm72_vm3, %v43_v15  ;;  %vm839_vm3 = vcmask 1042434  }
  0x76   :  { %116 = vst.msk [vmem:[#allocation2 - $0x2] sm:$0xfc] %vm115_vm4, %v86_v14  ;;  %vm841_vm4 = vcmask 1043459  }
  0x78   :  { %v88_v16 = vpop.permute.xlu1 %87  ;;  %v45_v17 = vpop.permute.xlu0 %44 }
  0x79   :  { %75 = vst.msk [vmem:[#allocation2 + $0x7] sm:$0xff] %vm74_vm5, %v45_v17 }
  0x7a   :  { %118 = vst.msk [vmem:[#allocation2 + $0x6] sm:$0xff] %vm117_vm6, %v88_v16 }
  0x7d   :  { %v131_v18 = vpop.permute.xlu1 %130  ;;  %v129_v19 = vpop.permute.xlu0 %128 }
  0x7e   :  { %161 = vst.msk [vmem:[#allocation2 + $0x5] sm:$0xff] %vm160_vm7, %v131_v18 }
  0x7f   :  { %159 = vst.msk [vmem:[#allocation2 - $0x3] sm:$0xf8] %vm158_vm8, %v129_v19  ;;  %vm847_vm8 = vcmask 1046534  }
  0x81   :  { %v174_v20 = vpop.permute.xlu1 %173  ;;  %v172_v21 = vpop.permute.xlu0 %171 }
  0x82   :  { %204 = vst.msk [vmem:[#allocation2 + $0x4] sm:$0xff] %vm203_vm9, %v174_v20 }
  0x83   :  { %202 = vst.msk [vmem:[#allocation2 - $0x4] sm:$0xf0] %vm201_vm10, %v172_v21  ;;  %vm876_vm10 = vcmask 1040384  }
  0x85   :  { %v47_v22 = vpop.permute.xlu0 %46  ;;  %v90_v23 = vpop.permute.xlu1 %89 }
  0x86   :  { %76 = vst.msk [vmem:[#allocation2 + $0xf] sm:$0xff] %vm74_vm5, %v47_v22 }
  0x87   :  { %119 = vst.msk [vmem:[#allocation2 + $0xe] sm:$0xff] %vm117_vm6, %v90_v23 }
  0x89   :  { %v133_v24 = vpop.permute.xlu0 %132  ;;  %v176_v25 = vpop.permute.xlu1 %175 }
  0x8a   :  { %v214_v26 = vld [vmem:[#allocation2] sm:$0xff]  ;;  %162 = vst.msk [vmem:[#allocation2 + $0xd] sm:$0xff] %vm160_vm7, %v133_v24 }
  0x8b   :  { %2122 = vmatmul.mubr.msk.f32.vlgmr.msra.gmra.mxu0 %vm228_vm11, %v214_v26  ;;  %205 = vst.msk [vmem:[#allocation2 + $0xc] sm:$0xff] %vm203_vm9, %v176_v25 }
  0x8c   :  { %2124 = vmatprep.mubr.msk.f32.mxu0 %vm2240_vm2, %v2239_v10 }
  0x8d   :  { %v49_v27 = vpop.permute.xlu0 %48  ;;  %v92_v28 = vpop.permute.xlu1 %91 }
  0x8e   :  { %77 = vst.msk [vmem:[#allocation2 + $0x17] sm:$0xff] %vm74_vm5, %v49_v27 }
  0x8f   :  { %120 = vst.msk [vmem:[#allocation2 + $0x16] sm:$0xff] %vm117_vm6, %v92_v28 }
  0x91   :  { %v135_v29 = vpop.permute.xlu0 %134  ;;  %v178_v30 = vpop.permute.xlu1 %177 }
  0x92   :  { %163 = vst.msk [vmem:[#allocation2 + $0x15] sm:$0xff] %vm160_vm7, %v135_v29  ;;  %v215_v31 = vld [vmem:[#allocation2 + $0x8] sm:$0xff] }
  0x93   :  { %206 = vst.msk [vmem:[#allocation2 + $0x14] sm:$0xff] %vm203_vm9, %v178_v30  ;;  %2125 = vmatmul.mubr.msk.f32.gmra.mxu0 %vm228_vm11, %v215_v31 }
  0x94   :  { %2127 = vmatprep.mubr.msk.f32.mxu0 %vm2240_vm2, %v2239_v10 }
  0x95   :  { %v51_v32 = vpop.permute.xlu0 %50  ;;  %v94_v33 = vpop.permute.xlu1 %93 }
  0x96   :  { %78 = vst.msk [vmem:[#allocation2 + $0x1f] sm:$0xff] %vm74_vm5, %v51_v32 }
  0x97   :  { %121 = vst.msk [vmem:[#allocation2 + $0x1e] sm:$0xff] %vm117_vm6, %v94_v33 }
  0x99   :  { %v137_v34 = vpop.permute.xlu0 %136  ;;  %v180_v35 = vpop.permute.xlu1 %179 }
  0x9a   :  { %164 = vst.msk [vmem:[#allocation2 + $0x1d] sm:$0xff] %vm160_vm7, %v137_v34  ;;  %v216_v36 = vld [vmem:[#allocation2 + $0x10] sm:$0xff] }
  0x9b   :  { %207 = vst.msk [vmem:[#allocation2 + $0x1c] sm:$0xff] %vm203_vm9, %v180_v35  ;;  %2128 = vmatmul.mubr.msk.f32.gmra.mxu0 %vm228_vm11, %v216_v36 }
  0x9c   :  { %2130 = vmatprep.mubr.msk.f32.mxu0 %vm2240_vm2, %v2239_v10 }
  0x9d   :  { %v53_v37 = vpop.permute.xlu0 %52  ;;  %v96_v38 = vpop.permute.xlu1 %95 }
  0x9e   :  { %79 = vst.msk [vmem:[#allocation2 + $0x27] sm:$0xff] %vm74_vm5, %v53_v37 }
  0x9f   :  { %122 = vst.msk [vmem:[#allocation2 + $0x26] sm:$0xff] %vm117_vm6, %v96_v38 }
  0xa1   :  { %v139_v39 = vpop.permute.xlu0 %138  ;;  %v182_v40 = vpop.permute.xlu1 %181 }
  0xa2   :  { %165 = vst.msk [vmem:[#allocation2 + $0x25] sm:$0xff] %vm160_vm7, %v139_v39  ;;  %v217_v41 = vld [vmem:[#allocation2 + $0x18] sm:$0xff] }
  0xa3   :  { %208 = vst.msk [vmem:[#allocation2 + $0x24] sm:$0xff] %vm203_vm9, %v182_v40  ;;  %2131 = vmatmul.mubr.msk.f32.gmra.mxu0 %vm228_vm11, %v217_v41 }
  0xa4   :  { %2133 = vmatprep.mubr.msk.f32.mxu0 %vm2240_vm2, %v2239_v10 }
  0xa5   :  { %v55_v42 = vpop.permute.xlu0 %54  ;;  %v98_v43 = vpop.permute.xlu1 %97 }
  0xa6   :  { %80 = vst.msk [vmem:[#allocation2 + $0x2f] sm:$0xff] %vm74_vm5, %v55_v42 }
  0xa7   :  { %123 = vst.msk [vmem:[#allocation2 + $0x2e] sm:$0xff] %vm117_vm6, %v98_v43 }
  0xa9   :  { %v141_v44 = vpop.permute.xlu0 %140  ;;  %v184_v45 = vpop.permute.xlu1 %183 }
  0xaa   :  { %166 = vst.msk [vmem:[#allocation2 + $0x2d] sm:$0xff] %vm160_vm7, %v141_v44  ;;  %v218_v46 = vld [vmem:[#allocation2 + $0x20] sm:$0xff] }
  0xab   :  { %209 = vst.msk [vmem:[#allocation2 + $0x2c] sm:$0xff] %vm203_vm9, %v184_v45  ;;  %2134 = vmatmul.mubr.msk.f32.gmra.mxu0 %vm228_vm11, %v218_v46 }
  0xac   :  { %2136 = vmatprep.mubr.msk.f32.mxu0 %vm2240_vm2, %v2239_v10 }
  0xad   :  { %v57_v47 = vpop.permute.xlu0 %56  ;;  %v100_v48 = vpop.permute.xlu1 %99 }
  0xae   :  { %81 = vst.msk [vmem:[#allocation2 + $0x37] sm:$0xff] %vm74_vm5, %v57_v47 }
  0xaf   :  { %124 = vst.msk [vmem:[#allocation2 + $0x36] sm:$0xff] %vm117_vm6, %v100_v48 }
  0xb1   :  { %v143_v49 = vpop.permute.xlu0 %142  ;;  %v186_v50 = vpop.permute.xlu1 %185 }
  0xb2   :  { %167 = vst.msk [vmem:[#allocation2 + $0x35] sm:$0xff] %vm160_vm7, %v143_v49  ;;  %v219_v51 = vld [vmem:[#allocation2 + $0x28] sm:$0xff] }
  0xb3   :  { %210 = vst.msk [vmem:[#allocation2 + $0x34] sm:$0xff] %vm203_vm9, %v186_v50  ;;  %2137 = vmatmul.mubr.msk.f32.gmra.mxu0 %vm228_vm11, %v219_v51 }
  0xb4   :  { %2139 = vmatprep.mubr.msk.f32.mxu0 %vm2240_vm2, %v2239_v10 }
  0xb5   :  { %v59_v52 = vpop.permute.xlu0 %58  ;;  %v102_v53 = vpop.permute.xlu1 %101 }
  0xb6   :  { %82 = vst.msk [vmem:[#allocation2 + $0x3f] sm:$0xff] %vm74_vm5, %v59_v52  ;;  %vm2829_vm5 = vcmask 1041409  }
  0xb7   :  { %125 = vst.msk [vmem:[#allocation2 + $0x3e] sm:$0xff] %vm117_vm6, %v102_v53  ;;  %vm843_vm6 = vcmask 1044484  }
  0xb9   :  { %v145_v54 = vpop.permute.xlu0 %144  ;;  %v188_v55 = vpop.permute.xlu1 %187 }
  0xba   :  { %168 = vst.msk [vmem:[#allocation2 + $0x3d] sm:$0xff] %vm160_vm7, %v145_v54  ;;  %v220_v56 = vld [vmem:[#allocation2 + $0x30] sm:$0xff]  ;;  %vm845_vm7 = vcmask 1045509  }
  0xbb   :  { %211 = vst.msk [vmem:[#allocation2 + $0x3c] sm:$0xff] %vm203_vm9, %v188_v55  ;;  %2140 = vmatmul.mubr.msk.f32.gmra.mxu0 %vm228_vm11, %v220_v56  ;;  %vm849_vm9 = vcmask 1047559  }
  0xbc   :  { %2142 = vmatprep.mubr.msk.f32.mxu0 %vm2240_vm2, %v2239_v10 }
  0xbd   :  { %v61_v57 = vpop.permute.xlu0 %60  ;;  %v104_v58 = vpop.permute.xlu1 %103 }
  0xbe   :  { %84 = vst.msk [vmem:[#allocation2 + $0x47] sm:$0x1] %vm83_vm12, %v61_v57  ;;  %vm2830_vm12 = vcmask 60416  }
  0xbf   :  { %127 = vst.msk [vmem:[#allocation2 + $0x46] sm:$0x3] %vm126_vm13, %v104_v58  ;;  %vm2832_vm13 = vcmask 130113  }
  0xc1   :  { %v147_v59 = vpop.permute.xlu0 %146  ;;  %v190_v60 = vpop.permute.xlu1 %189 }
  0xc2   :  { %170 = vst.msk [vmem:[#allocation2 + $0x45] sm:$0x7] %vm169_vm14, %v147_v59  ;;  %v221_v61 = vld [vmem:[#allocation2 + $0x38] sm:$0xff]  ;;  %vm2831_vm14 = vcmask 195714  }
  0xc3   :  { %213 = vst.msk [vmem:[#allocation2 + $0x44] sm:$0xf] %vm212_vm15, %v190_v60  ;;  %2143 = vmatmul.mubr.msk.f32.gmra.mxu0 %vm228_vm11, %v221_v61  ;;  %vm1074_vm15 = vcmask 130112  }
  0xc4   :  { %2145 = vmatprep.mubr.msk.f32.mxu0 %vm2240_vm2, %v2239_v10 }
  0xca   :  { %v222_v62 = vld [vmem:[#allocation2 + $0x40] sm:$0xff] }
  0xcb   :  { %2146 = vmatmul.mubr.msk.f32.gmra.mxu0 %vm228_vm11, %v222_v62  ;;  %vm1049_vm11 = vcmask 64512  }
  0xcc   :  { %2199 = vmatprep.mubr.msk.f32.mxu0 %vm2240_vm2, %v2239_v10 }
 0x14b   :  { %v326_v6 = vpop.f32.mrf.mxu0 }
 0x14c   :  { %v374_v7 = vmul.f32 %v2421_v2, %v326_v6 }
 0x14d   :  { %v2123_v8 = vpop.f32.mrf.mxu0 }
 0x14e   :  { %v387_v9 = vadd.f32 %v2426_v5, %v374_v7 }
 0x150   :  { %v396_v12 = vmax.f32 %v387_v9, 0.0 }
 0x152   :  { %v414_v13 = vcombine.high %v396_v12, %v396_v12  ;;  %v428_v14 = vrot.slane %v396_v12, %v2430_v11 }
 0x153   :  { %v331_v18 = vpop.f32.mrf.mxu0 }
 0x154   :  { %v429_v15 = vcombine.high %v428_v14, %v428_v14  ;;  %v436_v16 = vrot.slane %v414_v13, %v2430_v11  ;;  %v583_v17 = vsel %vm582_vm0, %v428_v14, -inf  ;;  %v375_v20 = vmul.f32 %v2421_v2, %v331_v18 }
 0x155   :  { %v584_v19 = vrot.slane %v583_v17, 4  ;;  %v2126_v24 = vpop.f32.mrf.mxu0 }
 0x156   :  { %v437_v21 = vcombine.high %v436_v16, %v436_v16  ;;  %v590_v22 = vsel %vm582_vm0, %v429_v15, -inf  ;;  %v597_v23 = vsel %vm582_vm0, %v436_v16, -inf  ;;  %v388_v28 = vadd.f32 %v2426_v5, %v375_v20 }
 0x157   :  { %v585_v25 = vmax.f32 %v583_v17, %v584_v19  ;;  %v591_v26 = vrot.slane %v590_v22, 4  ;;  %v598_v27 = vrot.slane %v597_v23, 4 }
 0x158   :  { %v604_v29 = vsel %vm582_vm0, %v437_v21, -inf  ;;  %v397_v34 = vmax.f32 %v388_v28, 0.0 }
 0x159   :  { %v586_v30 = vrot.slane %v585_v25, 2  ;;  %v592_v31 = vmax.f32 %v590_v22, %v591_v26  ;;  %v599_v32 = vmax.f32 %v597_v23, %v598_v27  ;;  %v605_v33 = vrot.slane %v604_v29, 4 }
 0x15a   :  { %v415_v39 = vcombine.high %v397_v34, %v397_v34  ;;  %v444_v40 = vrot.slane %v397_v34, %v2430_v11 }
 0x15b   :  { %v587_v35 = vmax.f32 %v585_v25, %v586_v30  ;;  %v593_v36 = vrot.slane %v592_v31, 2  ;;  %v600_v37 = vrot.slane %v599_v32, 2  ;;  %v606_v38 = vmax.f32 %v604_v29, %v605_v33  ;;  %v336_v41 = vpop.f32.mrf.mxu0 }
 0x15c   :  { %v445_v45 = vcombine.high %v444_v40, %v444_v40  ;;  %v452_v46 = vrot.slane %v415_v39, %v2430_v11  ;;  %v611_v47 = vsel %vm582_vm0, %v444_v40, -inf  ;;  %v376_v48 = vmul.f32 %v2421_v2, %v336_v41 }
 0x15d   :  { %v594_v42 = vmax.f32 %v592_v31, %v593_v36  ;;  %v601_v43 = vmax.f32 %v599_v32, %v600_v37  ;;  %v607_v44 = vrot.slane %v606_v38, 2  ;;  %v2129_v49 = vpop.f32.mrf.mxu0  ;;  %v588_v50 = vrot.slane %v587_v35, 1 }
 0x15e   :  { %v453_v53 = vcombine.high %v452_v46, %v452_v46  ;;  %v612_v54 = vrot.slane %v611_v47, 4  ;;  %v618_v55 = vsel %vm582_vm0, %v445_v45, -inf  ;;  %v625_v56 = vsel %vm582_vm0, %v452_v46, -inf }
 0x15f   :  { %v595_v51 = vrot.slane %v594_v42, 1  ;;  %v602_v52 = vrot.slane %v601_v43, 1  ;;  %v608_v57 = vmax.f32 %v606_v38, %v607_v44  ;;  %v619_v58 = vrot.slane %v618_v55, 4 }
 0x160   :  { %v613_v59 = vmax.f32 %v611_v47, %v612_v54  ;;  %v626_v60 = vrot.slane %v625_v56, 4  ;;  %v632_v61 = vsel %vm582_vm0, %v453_v53, -inf  ;;  %v389_v62 = vadd.f32 %v2426_v5, %v376_v48 }
 0x161   :  { %v589_v63 = vmax.f32 %v587_v35, %v588_v50  ;;  %v596_v0 = vmax.f32 %v594_v42, %v595_v51  ;;  %v620_v1 = vmax.f32 %v618_v55, %v619_v58  ;;  %v633_v3 = vrot.slane %v632_v61, 4 }
 0x162   :  { %v603_v4 = vmax.f32 %v601_v43, %v602_v52  ;;  %v614_v6 = vrot.slane %v613_v59, 2  ;;  %v627_v7 = vmax.f32 %v625_v56, %v626_v60  ;;  %v398_v8 = vmax.f32 %v389_v62, 0.0 }
 0x163   :  { %v341_v9 = vpop.f32.mrf.mxu0  ;;  %v609_v12 = vrot.slane %v608_v57, 1  ;;  %v621_v13 = vrot.slane %v620_v1, 2  ;;  %v634_v14 = vmax.f32 %v632_v61, %v633_v3  ;;  %v840_v21 = vsel %vm839_vm3, %v596_v0, %v589_v63 }
 0x164   :  { %v377_v15 = vmul.f32 %v2421_v2, %v341_v9  ;;  %v615_v16 = vmax.f32 %v613_v59, %v614_v6  ;;  %v628_v17 = vrot.slane %v627_v7, 2  ;;  %v416_v18 = vcombine.high %v398_v8, %v398_v8 }
 0x165   :  { %v460_v19 = vrot.slane %v398_v8, %v2430_v11  ;;  %v2132_v20 = vpop.f32.mrf.mxu0  ;;  %v2451_v22 = vmax.f32 %v620_v1, %v621_v13  ;;  %v635_v23 = vrot.slane %v634_v14, 2  ;;  %v2457_v29 = vmax.f32 %v608_v57, %v609_v12 }
 0x166   :  { %v390_v24 = vadd.f32 %v2426_v5, %v377_v15  ;;  %v616_v25 = vrot.slane %v615_v16, 1  ;;  %v2454_v26 = vmax.f32 %v627_v7, %v628_v17  ;;  %v468_v28 = vrot.slane %v416_v18, %v2430_v11 }
 0x167   :  { %v461_v27 = vcombine.high %v460_v19, %v460_v19  ;;  %v636_v30 = vmax.f32 %v634_v14, %v635_v23  ;;  %v639_v31 = vsel %vm582_vm0, %v460_v19, -inf  ;;  %v2461_v33 = vsel %vm841_vm4, %v603_v4, %v840_v21 }
 0x168   :  { %v399_v32 = vmax.f32 %v390_v24, 0.0  ;;  %v623_v34 = vrot.slane %v2451_v22, 1  ;;  %v469_v35 = vcombine.high %v468_v28, %v468_v28  ;;  %v640_v36 = vrot.slane %v639_v31, 4 }
 0x169   :  { %v2464_v37 = vmax.f32 %v615_v16, %v616_v25  ;;  %v637_v38 = vrot.slane %v636_v30, 1  ;;  %v646_v39 = vsel %vm582_vm0, %v461_v27, -inf  ;;  %v653_v40 = vsel %vm582_vm0, %v468_v28, -inf }
 0x16a   :  { %v630_v41 = vrot.slane %v2454_v26, 1  ;;  %v641_v42 = vmax.f32 %v639_v31, %v640_v36  ;;  %v647_v43 = vrot.slane %v646_v39, 4  ;;  %v654_v44 = vrot.slane %v653_v40, 4 }
 0x16b   :  { %v346_v45 = vpop.f32.mrf.mxu0  ;;  %v638_v46 = vmax.f32 %v636_v30, %v637_v38  ;;  %v660_v47 = vsel %vm582_vm0, %v469_v35, -inf  ;;  %v417_v48 = vcombine.high %v399_v32, %v399_v32  ;;  %v476_v49 = vrot.slane %v399_v32, %v2430_v11 }
 0x16c   :  { %v642_v50 = vrot.slane %v641_v42, 2  ;;  %v648_v51 = vmax.f32 %v646_v39, %v647_v43  ;;  %v655_v52 = vmax.f32 %v653_v40, %v654_v44  ;;  %v661_v53 = vrot.slane %v660_v47, 4 }
 0x16d   :  { %v2135_v54 = vpop.f32.mrf.mxu0  ;;  %v477_v55 = vcombine.high %v476_v49, %v476_v49  ;;  %v484_v56 = vrot.slane %v417_v48, %v2430_v11  ;;  %v667_v57 = vsel %vm582_vm0, %v476_v49, -inf  ;;  %v378_v58 = vmul.f32 %v2421_v2, %v346_v45 }
 0x16e   :  { %v643_v59 = vmax.f32 %v641_v42, %v642_v50  ;;  %v649_v60 = vrot.slane %v648_v51, 2  ;;  %v656_v61 = vrot.slane %v655_v52, 2  ;;  %v662_v62 = vmax.f32 %v660_v47, %v661_v53 }
 0x16f   :  { %v485_v63 = vcombine.high %v484_v56, %v484_v56  ;;  %v668_v0 = vrot.slane %v667_v57, 4  ;;  %v674_v1 = vsel %vm582_vm0, %v477_v55, -inf  ;;  %v681_v3 = vsel %vm582_vm0, %v484_v56, -inf }
 0x170   :  { %v644_v4 = vrot.slane %v643_v59, 1  ;;  %v650_v6 = vmax.f32 %v648_v51, %v649_v60  ;;  %v657_v7 = vmax.f32 %v655_v52, %v656_v61  ;;  %v663_v8 = vrot.slane %v662_v62, 2 }
 0x171   :  { %v669_v9 = vmax.f32 %v667_v57, %v668_v0  ;;  %v675_v12 = vrot.slane %v674_v1, 4  ;;  %v682_v13 = vrot.slane %v681_v3, 4  ;;  %v688_v14 = vsel %vm582_vm0, %v485_v63, -inf }
 0x172   :  { %v645_v15 = vmax.f32 %v643_v59, %v644_v4  ;;  %v651_v16 = vrot.slane %v650_v6, 1  ;;  %v658_v17 = vrot.slane %v657_v7, 1  ;;  %v664_v18 = vmax.f32 %v662_v62, %v663_v8 }
 0x173   :  { %v351_v19 = vpop.f32.mrf.mxu0  ;;  %v670_v20 = vrot.slane %v669_v9, 2  ;;  %v676_v21 = vmax.f32 %v674_v1, %v675_v12  ;;  %v683_v23 = vmax.f32 %v681_v3, %v682_v13  ;;  %v689_v24 = vrot.slane %v688_v14, 4 }
 0x174   :  { %v624_v25 = vmax.f32 %v2451_v22, %v623_v34  ;;  %v652_v27 = vmax.f32 %v650_v6, %v651_v16  ;;  %v665_v28 = vrot.slane %v664_v18, 1  ;;  %v852_v30 = vsel %vm2829_vm5, %v645_v15, %v638_v46 }
 0x175   :  { %v2138_v31 = vpop.f32.mrf.mxu0  ;;  %v671_v32 = vmax.f32 %v669_v9, %v670_v20  ;;  %v677_v35 = vrot.slane %v676_v21, 2  ;;  %v684_v36 = vrot.slane %v683_v23, 2  ;;  %v690_v38 = vmax.f32 %v688_v14, %v689_v24 }
 0x176   :  { %v631_v39 = vmax.f32 %v2454_v26, %v630_v41  ;;  %v659_v40 = vmax.f32 %v657_v7, %v658_v17  ;;  %v391_v42 = vadd.f32 %v2426_v5, %v378_v58  ;;  %v379_v43 = vmul.f32 %v2421_v2, %v351_v19 }
 0x177   :  { %v853_v44 = vsel %vm839_vm3, %v652_v27, %v852_v30  ;;  %v672_v45 = vrot.slane %v671_v32, 1  ;;  %v2483_v22 = vmax.f32 %v676_v21, %v677_v35  ;;  %v844_v34 = vsel %vm843_vm6, %v2457_v29, %v2461_v33 }
 0x178   :  { %v400_v46 = vmax.f32 %v391_v42, 0.0  ;;  %v392_v47 = vadd.f32 %v2426_v5, %v379_v43  ;;  %v846_v26 = vsel %vm845_vm7, %v2464_v37, %v844_v34  ;;  %v2491_v41 = vmax.f32 %v664_v18, %v665_v28 }
 0x179   :  { %v2493_v48 = vmax.f32 %v683_v23, %v684_v36  ;;  %v691_v49 = vrot.slane %v690_v38, 2  ;;  %v848_v50 = vsel %vm847_vm8, %v624_v25, %v846_v26  ;;  %v2497_v51 = vsel %vm841_vm4, %v659_v40, %v853_v44 }
 0x17a   :  { %v418_v52 = vcombine.high %v400_v46, %v400_v46  ;;  %v401_v53 = vmax.f32 %v392_v47, 0.0  ;;  %v850_v29 = vsel %vm849_vm9, %v631_v39, %v848_v50  ;;  %v2500_v54 = vmax.f32 %v671_v32, %v672_v45 }
 0x17b   :  { %v356_v33 = vpop.f32.mrf.mxu0  ;;  %v679_v37 = vrot.slane %v2483_v22, 1  ;;  %v877_v55 = vsel %vm876_vm10, 0.0, %v850_v29  ;;  %v686_v62 = vrot.slane %v2493_v48, 1  ;;  %v2508_v63 = vmax.f32 %v690_v38, %v691_v49 }
 0x17c   :  { %v380_v56 = vmul.f32 %v2421_v2, %v356_v33  ;;  %v492_v57 = vrot.slane %v418_v52, %v2430_v11  ;;  %v419_v58 = vcombine.high %v401_v53, %v401_v53  ;;  %v500_v59 = vrot.slane %v401_v53, %v2430_v11 }
 0x17d   :  { %v885_v60 = vcombine.high %v877_v55, %v877_v55  ;;  %v2141_v61 = vpop.f32.mrf.mxu0  ;;  %v892_v0 = vrot.slane %v877_v55, %v2430_v11  ;;  %v680_v33 = vmax.f32 %v2483_v22, %v679_v37  ;;  %v855_v22 = vsel %vm843_vm6, %v2491_v41, %v2497_v51 }
 0x17e   :  { %v393_v1 = vadd.f32 %v2426_v5, %v380_v56  ;;  %v493_v3 = vcombine.high %v492_v57, %v492_v57  ;;  %v695_v4 = vsel %vm582_vm0, %v492_v57, -inf  ;;  %v501_v6 = vcombine.high %v500_v59, %v500_v59 }
 0x17f   :  { %v508_v7 = vrot.slane %v419_v58, %v2430_v11  ;;  %v696_v8 = vrot.slane %v695_v4, 4  ;;  %v709_v9 = vsel %vm582_vm0, %v500_v59, -inf  ;;  %v899_v12 = vrot.slane %v885_v60, %v2430_v11 }
 0x180   :  { %v900_v13 = vcombine.high %v892_v0, %v892_v0  ;;  %v702_v14 = vsel %vm582_vm0, %v493_v3, -inf  ;;  %v710_v16 = vrot.slane %v709_v9, 4  ;;  %v716_v17 = vsel %vm582_vm0, %v501_v6, -inf }
 0x181   :  { %v509_v15 = vcombine.high %v508_v7, %v508_v7  ;;  %v697_v18 = vmax.f32 %v695_v4, %v696_v8  ;;  %v703_v19 = vrot.slane %v702_v14, 4  ;;  %v717_v20 = vrot.slane %v716_v17, 4 }
 0x182   :  { %v723_v21 = vsel %vm582_vm0, %v508_v7, -inf  ;;  %v711_v23 = vmax.f32 %v709_v9, %v710_v16  ;;  %v901_v27 = vcombine.high %v899_v12, %v899_v12  ;;  %v967_v39 = vcombine.low %v892_v0, %v900_v13 }
 0x183   :  { %v724_v24 = vrot.slane %v723_v21, 4  ;;  %v730_v25 = vsel %vm582_vm0, %v509_v15, -inf  ;;  %v361_v28 = vpop.f32.mrf.mxu0  ;;  %v698_v30 = vrot.slane %v697_v18, 2  ;;  %v704_v31 = vmax.f32 %v702_v14, %v703_v19 }
 0x184   :  { %v718_v32 = vmax.f32 %v716_v17, %v717_v20  ;;  %v731_v35 = vrot.slane %v730_v25, 4  ;;  %v712_v36 = vrot.slane %v711_v23, 2  ;;  %v968_v40 = vcombine.low %v899_v12, %v901_v27 }
 0x185   :  { %v725_v38 = vmax.f32 %v723_v21, %v724_v24  ;;  %v2144_v42 = vpop.f32.mrf.mxu0  ;;  %v699_v43 = vmax.f32 %v697_v18, %v698_v30  ;;  %v705_v44 = vrot.slane %v704_v31, 2  ;;  %v975_v26 = vrot.slane %v967_v39, %v2430_v11 }
 0x186   :  { %v719_v45 = vrot.slane %v718_v32, 2  ;;  %v732_v34 = vmax.f32 %v730_v25, %v731_v35  ;;  %v713_v46 = vmax.f32 %v711_v23, %v712_v36  ;;  %v982_v49 = vrot.slane %v968_v40, %v2430_v11 }
 0x187   :  { %v726_v47 = vrot.slane %v725_v38, 2  ;;  %v700_v50 = vrot.slane %v699_v43, 1  ;;  %v706_v52 = vmax.f32 %v704_v31, %v705_v44  ;;  %v402_v57 = vmax.f32 %v393_v1, 0.0 }
 0x188   :  { %v720_v53 = vmax.f32 %v718_v32, %v719_v45  ;;  %v733_v29 = vrot.slane %v732_v34, 2  ;;  %v714_v55 = vrot.slane %v713_v46, 1  ;;  %v983_v56 = vcombine.low %v975_v26, %v982_v49 }
 0x189   :  { %v2524_v58 = vmax.f32 %v2493_v48, %v686_v62  ;;  %v707_v59 = vrot.slane %v706_v52, 1  ;;  %v727_v61 = vmax.f32 %v725_v38, %v726_v47  ;;  %v420_v3 = vcombine.high %v402_v57, %v402_v57 }
 0x18a   :  { %v721_v60 = vrot.slane %v720_v53, 1  ;;  %v2526_v0 = vmax.f32 %v732_v34, %v733_v29  ;;  %1057 = vrot.lane.b32.xlu0 %v983_v56, %s2237_s15  ;;  %v516_v4 = vrot.slane %v402_v57, %v2430_v11  ;;  %1050 = vst.msk [vmem:[#allocation2] sm:$0xff] %vm1049_vm11, %v983_v56  ;;  %v701_v1 = vmax.f32 %v699_v43, %v700_v50 }
 0x18b   :  { %v366_v37 = vpop.f32.mrf.mxu0  ;;  %v708_v48 = vmax.f32 %v706_v52, %v707_v59  ;;  %v381_v62 = vmul.f32 %v2421_v2, %v361_v28  ;;  %v693_v6 = vrot.slane %v2508_v63, 1  ;;  %v715_v7 = vmax.f32 %v713_v46, %v714_v55 }
 0x18c   :  { %v517_v8 = vcombine.high %v516_v4, %v516_v4  ;;  %v524_v9 = vrot.slane %v420_v3, %v2430_v11  ;;  %v737_v12 = vsel %vm582_vm0, %v516_v4, -inf  ;;  %v2538_v14 = vmax.f32 %v720_v53, %v721_v60 }
 0x18d   :  { %v2147_v13 = vpop.f32.mrf.mxu0  ;;  %v728_v15 = vrot.slane %v727_v61, 1  ;;  %v738_v41 = vrot.slane %v737_v12, 4  ;;  %v394_v51 = vadd.f32 %v2426_v5, %v381_v62  ;;  %v735_v16 = vrot.slane %v2526_v0, 1 }
 0x18e   :  { %v525_v17 = vcombine.high %v524_v9, %v524_v9  ;;  %v744_v18 = vsel %vm582_vm0, %v517_v8, -inf  ;;  %v751_v19 = vsel %vm582_vm0, %v524_v9, -inf  ;;  %1080 = vrot.lane.b32.xlu0 %v983_v56, %s2242_s8  ;;  %v859_v20 = vsel %vm839_vm3, %v708_v48, %v701_v1 }
 0x18f   :  { %v739_v21 = vmax.f32 %v737_v12, %v738_v41  ;;  %v745_v23 = vrot.slane %v744_v18, 4  ;;  %v752_v24 = vrot.slane %v751_v19, 4  ;;  %v403_v27 = vmax.f32 %v394_v51, 0.0 }
 0x190   :  { %v758_v25 = vsel %vm582_vm0, %v525_v17, -inf  ;;  %v856_v28 = vsel %vm845_vm7, %v2500_v54, %v855_v22  ;;  %v382_v30 = vmul.f32 %v2421_v2, %v366_v37  ;;  %v2550_v38 = vmax.f32 %v727_v61, %v728_v15 }
 0x191   :  { %v740_v31 = vrot.slane %v739_v21, 2  ;;  %v746_v32 = vmax.f32 %v744_v18, %v745_v23  ;;  %v753_v35 = vmax.f32 %v751_v19, %v752_v24  ;;  %v759_v36 = vrot.slane %v758_v25, 4  ;;  %v1110_v24 = vld [vmem:[%s2827_s1 + $0x28] sm:$0xff] }
 0x192   :  { %v860_v39 = vsel %vm841_vm4, %v715_v7, %v859_v20  ;;  %v421_v40 = vcombine.high %v403_v27, %v403_v27  ;;  %v532_v42 = vrot.slane %v403_v27, %v2430_v11  ;;  %v857_v34 = vsel %vm847_vm8, %v680_v33, %v856_v28  ;;  %2149 = vmatpush3.msra.mxu1 %v1110_v24 }
 0x193   :  { %v747_v43 = vrot.slane %v746_v32, 2  ;;  %v754_v44 = vrot.slane %v753_v35, 2  ;;  %v760_v45 = vmax.f32 %v758_v25, %v759_v36  ;;  %v395_v47 = vadd.f32 %v2426_v5, %v382_v30  ;;  %v1109_v25 = vld [vmem:[%s2827_s1 + $0x20] sm:$0xff]  ;;  %2150 = vmatprep.subr.mxu1 %v2239_v10 }
 0x194   :  { %v533_v46 = vcombine.high %v532_v42, %v532_v42  ;;  %v540_v54 = vrot.slane %v421_v40, %v2430_v11  ;;  %v765_v2 = vsel %vm582_vm0, %v532_v42, -inf  ;;  %v741_v26 = vmax.f32 %v739_v21, %v740_v31  ;;  %v1108_v42 = vld [vmem:[%s2827_s1 + $0x18] sm:$0xff]  ;;  %2151 = vmatpush3.msra.mxu1 %v1109_v25 }
 0x195   :  { %v748_v49 = vmax.f32 %v746_v32, %v747_v43  ;;  %v755_v50 = vmax.f32 %v753_v35, %v754_v44  ;;  %v761_v52 = vrot.slane %v760_v45, 2  ;;  %v766_v29 = vrot.slane %v765_v2, 4  ;;  %2152 = vmatprep.subr.mxu1 %v2239_v10 }
 0x196   :  { %v541_v53 = vcombine.high %v540_v54, %v540_v54  ;;  %v772_v55 = vsel %vm582_vm0, %v533_v46, -inf  ;;  %v779_v56 = vsel %vm582_vm0, %v540_v54, -inf  ;;  %v858_v60 = vsel %vm849_vm9, %v2524_v58, %v857_v34  ;;  %2153 = vmatpush3.msra.mxu1 %v1108_v42 }
 0x197   :  { %v749_v57 = vrot.slane %v748_v49, 1  ;;  %v756_v59 = vrot.slane %v755_v50, 1  ;;  %v762_v33 = vmax.f32 %v760_v45, %v761_v52  ;;  %v767_v61 = vmax.f32 %v765_v2, %v766_v29  ;;  %2169 = vmatprep.subr.mxu1 %v2239_v10 }
 0x198   :  { %v773_v3 = vrot.slane %v772_v55, 4  ;;  %v780_v4 = vrot.slane %v779_v56, 4  ;;  %v786_v5 = vsel %vm582_vm0, %v541_v53, -inf  ;;  %v902_v9 = vcombine.high %v858_v60, %v858_v60 }
 0x199   :  { %v750_v22 = vmax.f32 %v748_v49, %v749_v57  ;;  %v757_v37 = vmax.f32 %v755_v50, %v756_v59  ;;  %v763_v1 = vrot.slane %v762_v33, 1  ;;  %v787_v48 = vrot.slane %v786_v5, 4 }
 0x19a   :  { %v768_v62 = vrot.slane %v767_v61, 2  ;;  %v774_v7 = vmax.f32 %v772_v55, %v773_v3  ;;  %v781_v8 = vmax.f32 %v779_v56, %v780_v4  ;;  %v742_v12 = vrot.slane %v741_v26, 1 }
 0x19b   :  { %v764_v13 = vmax.f32 %v762_v33, %v763_v1  ;;  %v788_v15 = vmax.f32 %v786_v5, %v787_v48  ;;  %v909_v41 = vrot.slane %v858_v60, %v2430_v11  ;;  %v916_v18 = vrot.slane %v902_v9, %v2430_v11 }
 0x19c   :  { %v769_v51 = vmax.f32 %v767_v61, %v768_v62  ;;  %v775_v58 = vrot.slane %v774_v7, 2  ;;  %v782_v17 = vrot.slane %v781_v8, 2  ;;  %v865_v19 = vsel %vm2829_vm5, %v757_v37, %v750_v22 }
 0x19d   :  { %v789_v20 = vrot.slane %v788_v15, 2  ;;  %v917_v21 = vcombine.high %v909_v41, %v909_v41  ;;  %v404_v23 = vmax.f32 %v395_v47, 0.0  ;;  %v918_v31 = vcombine.high %v916_v18, %v916_v18 }
 0x19e   :  { %v770_v27 = vrot.slane %v769_v51, 1  ;;  %v776_v28 = vmax.f32 %v774_v7, %v775_v58  ;;  %v783_v30 = vmax.f32 %v781_v8, %v782_v17  ;;  %v736_v32 = vmax.f32 %v2526_v0, %v735_v16 }
 0x19f   :  { %v861_v35 = vsel %vm843_vm6, %v2538_v14, %v860_v39  ;;  %v984_v36 = vcombine.low %v909_v41, %v917_v21  ;;  %v548_v40 = vrot.slane %v404_v23, %v2430_v11  ;;  %v743_v43 = vmax.f32 %v741_v26, %v742_v12 }
 0x1a0   :  { %v777_v44 = vrot.slane %v776_v28, 1  ;;  %v985_v45 = vcombine.low %v916_v18, %v918_v31  ;;  %v694_v34 = vmax.f32 %v2508_v63, %v693_v6  ;;  %v771_v0 = vmax.f32 %v769_v51, %v770_v27 }
 0x1a1   :  { %v866_v14 = vsel %vm839_vm3, %v764_v13, %v865_v19  ;;  %v549_v16 = vcombine.high %v548_v40, %v548_v40  ;;  %v793_v39 = vsel %vm582_vm0, %v548_v40, -inf  ;;  %v784_v46 = vrot.slane %v783_v30, 1 }
 0x1a2   :  { %v790_v54 = vmax.f32 %v788_v15, %v789_v20  ;;  %v992_v2 = vrot.slane %v984_v36, %v2430_v11  ;;  %v999_v47 = vrot.slane %v985_v45, %v2430_v11  ;;  %v778_v26 = vmax.f32 %v776_v28, %v777_v44 }
 0x1a3   :  { %v794_v49 = vrot.slane %v793_v39, 4  ;;  %v800_v63 = vsel %vm582_vm0, %v549_v16, -inf  ;;  %v862_v6 = vsel %vm845_vm7, %v2550_v38, %v861_v35  ;;  %v879_v29 = vsel %vm876_vm10, %v694_v34, 0.0 }
 0x1a4   :  { %v1000_v50 = vcombine.low %v992_v2, %v999_v47  ;;  %v801_v52 = vrot.slane %v800_v63, 4  ;;  %v863_v53 = vsel %vm847_vm8, %v736_v32, %v862_v6  ;;  %v867_v55 = vsel %vm841_vm4, %v771_v0, %v866_v14 }
 0x1a5   :  { %v795_v56 = vmax.f32 %v793_v39, %v794_v49  ;;  %v864_v57 = vsel %vm849_vm9, %v743_v43, %v863_v53  ;;  %v785_v59 = vmax.f32 %v783_v30, %v784_v46  ;;  %v791_v33 = vrot.slane %v790_v54, 1 }
 0x1a6   :  { %1059 = vrot.lane.b32.xlu1 %v1000_v50, %s2237_s15  ;;  %v802_v60 = vmax.f32 %v800_v63, %v801_v52  ;;  %v878_v38 = vsel %vm876_vm10, 0.0, %v864_v57  ;;  %1051 = vst.msk [vmem:[#allocation2 + $0x8] sm:$0xff] %vm1049_vm11, %v1000_v50  ;;  %v925_v3 = vrot.slane %v879_v29, %v2430_v11  ;;  %v868_v37 = vsel %vm843_vm6, %v778_v26, %v867_v55  ;;  %v2656_v29 = vld [vmem:[%s2827_s1 + $0x7a] ss:$0 sm:$0xff]  ;;  %v2661_v55 = vld [vmem:[%s2827_s1 + $0x7b] ss:$0 sm:$0xff] }
 0x1a7   :  { %v796_v61 = vrot.slane %v795_v56, 2  ;;  %v926_v4 = vcombine.high %v878_v38, %v878_v38  ;;  %v933_v5 = vrot.slane %v878_v38, %v2430_v11  ;;  %v792_v8 = vmax.f32 %v790_v54, %v791_v33 }
 0x1a8   :  { %v803_v22 = vrot.slane %v802_v60, 2  ;;  %v869_v15 = vsel %vm845_vm7, %v785_v59, %v868_v37  ;;  %vm1097_vm5 = vcmask 195712  }
 0x1a9   :  { %v797_v1 = vmax.f32 %v795_v56, %v796_v61  ;;  %v940_v48 = vrot.slane %v926_v4, %v2430_v11  ;;  %v941_v62 = vcombine.high %v933_v5, %v933_v5  ;;  %v1001_v7 = vcombine.low %v925_v3, %v933_v5 }
 0x1aa   :  { %v804_v9 = vmax.f32 %v802_v60, %v803_v22  ;;  %1082 = vrot.lane.b32.xlu1 %v1000_v50, %s2242_s8  ;;  %v870_v18 = vsel %vm847_vm8, %v792_v8, %v869_v15 }
 0x1ab   :  { %v798_v12 = vrot.slane %v797_v1, 1  ;;  %v1002_v13 = vcombine.low %v941_v62, %v940_v48  ;;  %v1009_v58 = vrot.slane %v1001_v7, %v2430_v11  ;;  %v942_v23 = vcombine.high %v940_v48, %v940_v48 }
 0x1ac   :  { %v805_v41 = vrot.slane %v804_v9, 1 }
 0x1ad   :  { %v799_v51 = vmax.f32 %v797_v1, %v798_v12  ;;  %v1016_v17 = vrot.slane %v1002_v13, %v2430_v11 }
 0x1ae   :  { %v806_v19 = vmax.f32 %v804_v9, %v805_v41 }
 0x1af   :  { %v1017_v20 = vcombine.low %v1009_v58, %v1016_v17  ;;  %v871_v21 = vsel %vm849_vm9, %v799_v51, %v870_v18 }
 0x1b0   :  { %v943_v24 = vcombine.high %v871_v21, %v871_v21  ;;  %v950_v25 = vrot.slane %v871_v21, %v2430_v11  ;;  %v880_v27 = vsel %vm876_vm10, %v806_v19, 0.0 }
 0x1b1   :  { %1084 = vrot.lane.b32.xlu1 %v1017_v20, %s2242_s8  ;;  %1061 = vrot.lane.b32.xlu0 %v1017_v20, %s2237_s15  ;;  %1052 = vst.msk [vmem:[#allocation2 + $0x10] sm:$0xff] %vm1049_vm11, %v1017_v20  ;;  %v966_v36 = vrot.slane %v880_v27, %v2430_v11 }
 0x1b2   :  { %v957_v28 = vrot.slane %v943_v24, %v2430_v11  ;;  %v958_v30 = vcombine.high %v950_v25, %v950_v25  ;;  %v1018_v31 = vcombine.low %v942_v23, %v950_v25 }
 0x1b4   :  { %v1019_v32 = vcombine.low %v958_v30, %v957_v28  ;;  %v959_v35 = vcombine.high %v957_v28, %v957_v28  ;;  %v1026_v40 = vrot.slane %v1018_v31, %v2430_v11 }
 0x1b6   :  { %v1033_v42 = vrot.slane %v1019_v32, %v2430_v11  ;;  %v1035_v43 = vcombine.low %v959_v35, %v966_v36 }
 0x1b8   :  { %v1034_v44 = vcombine.low %v1026_v40, %v1033_v42  ;;  %v1042_v45 = vrot.slane %v1035_v43, %v2430_v11 }
 0x1ba   :  { %1086 = vrot.lane.b32.xlu1 %v1034_v44, %s2242_s8  ;;  %1063 = vrot.lane.b32.xlu0 %v1034_v44, %s2237_s15  ;;  %v1048_v34 = vsel %vm256_vm1, %v1042_v45, 0.0  ;;  %1053 = vst.msk [vmem:[#allocation2 + $0x18] sm:$0xff] %vm1049_vm11, %v1034_v44 }
 0x1bb   :  { %1055 = vst.msk [vmem:[#allocation2 + $0x20] sm:$0xf] %vm2830_vm12, %v1048_v34  ;;  %vm1113_vm12 = vcmask 195584  }
 0x1be   :  { %1088 = vrot.lane.b32.xlu1 %v1048_v34, %s2242_s8  ;;  %1065 = vrot.lane.b32.xlu0 %v1048_v34, %s2237_s15 }
 0x1fc   :  { %v1058_v0 = vpop.permute.xlu0 %1057 }
 0x1fd   :  { %1073 = vst.msk [vmem:[#allocation2 - $0x1] sm:$0xfe] %vm2832_vm13, %v1058_v0  ;;  %vm1101_vm13 = vcmask 193664  }
 0x200   :  { %v1081_v14 = vpop.permute.xlu0 %1080 }
 0x201   :  { %1096 = vst.msk [vmem:[#allocation2 - $0x2] sm:$0xfc] %vm2831_vm14, %v1081_v14  ;;  %vm1078_vm14 = vcmask 127040  }
 0x218   :  { %v1060_v16 = vpop.permute.xlu1 %1059 }
 0x219   :  { %1075 = vst.msk [vmem:[#allocation2 + $0x7] sm:$0xff] %vm1074_vm15, %v1060_v16 }
 0x21c   :  { %v1083_v39 = vpop.permute.xlu1 %1082 }
 0x21d   :  { %1098 = vst.msk [vmem:[#allocation2 + $0x6] sm:$0xff] %vm1097_vm5, %v1083_v39 }
 0x223   :  { %v1085_v46 = vpop.permute.xlu1 %1084  ;;  %v1062_v54 = vpop.permute.xlu0 %1061 }
 0x224   :  { %v1103_v2 = vld [vmem:[#allocation2] sm:$0xff]  ;;  %1076 = vst.msk [vmem:[#allocation2 + $0xf] sm:$0xff] %vm1074_vm15, %v1062_v54 }
 0x225   :  { %2155 = vmatmul.mubr.msk.f32.vlgmr.msra.gmra.mxu1 %vm1113_vm12, %v1103_v2  ;;  %1099 = vst.msk [vmem:[#allocation2 + $0xe] sm:$0xff] %vm1097_vm5, %v1085_v46 }
 0x226   :  { %2157 = vmatprep.mubr.msk.f32.mxu1 %vm2240_vm2, %v2239_v10 }
 0x22c   :  { %v1104_v47 = vld [vmem:[#allocation2 + $0x8] sm:$0xff]  ;;  %v1087_v26 = vpop.permute.xlu1 %1086  ;;  %v1064_v49 = vpop.permute.xlu0 %1063 }
 0x22d   :  { %2158 = vmatmul.mubr.msk.f32.gmra.mxu1 %vm1113_vm12, %v1104_v47  ;;  %1077 = vst.msk [vmem:[#allocation2 + $0x17] sm:$0xff] %vm1074_vm15, %v1064_v49 }
 0x22e   :  { %1100 = vst.msk [vmem:[#allocation2 + $0x16] sm:$0xff] %vm1097_vm5, %v1087_v26  ;;  %2160 = vmatprep.mubr.msk.f32.mxu1 %vm2240_vm2, %v2239_v10 }
 0x230   :  { %v1089_v63 = vpop.permute.xlu1 %1088  ;;  %v1066_v6 = vpop.permute.xlu0 %1065 }
 0x231   :  { %1079 = vst.msk [vmem:[#allocation2 + $0x1f] sm:$0x1f] %vm1078_vm14, %v1066_v6 }
 0x232   :  { %1102 = vst.msk [vmem:[#allocation2 + $0x1e] sm:$0x3f] %vm1101_vm13, %v1089_v63 }
 0x235   :  { %v1105_v50 = vld [vmem:[#allocation2 + $0x10] sm:$0xff] }
 0x236   :  { %2161 = vmatmul.mubr.msk.f32.gmra.mxu1 %vm1113_vm12, %v1105_v50 }
 0x237   :  { %2163 = vmatprep.mubr.msk.f32.mxu1 %vm2240_vm2, %v2239_v10 }
 0x239   :  { %v1106_v52 = vld [vmem:[#allocation2 + $0x18] sm:$0xff]  ;;  %v1107_v53 = vld [vmem:[#allocation2 + $0x20] sm:$0xf] }
 0x23a   :  { %2164 = vmatmul.mubr.msk.f32.gmra.mxu1 %vm1113_vm12, %v1106_v52 }
 0x23b   :  { %2166 = vmatprep.mubr.msk.f32.mxu1 %vm2240_vm2, %v2239_v10 }
 0x23e   :  { %2167 = vmatmul.mubr.msk.f32.gmra.mxu1 %vm1113_vm12, %v1107_v53 }
 0x23f   :  { %2175 = vmatprep.mubr.msk.f32.mxu1 %vm2240_vm2, %v2239_v10 }
 0x2e5   :  { %v1195_v56 = vpop.f32.mrf.mxu1 }
 0x2e6   :  { %v1223_v57 = vmul.f32 %v2656_v29, %v1195_v56 }
 0x2e7   :  { %v2156_v59 = vpop.f32.mrf.mxu1 }
 0x2e8   :  { %v1232_v33 = vadd.f32 %v2661_v55, %v1223_v57 }
 0x2ea   :  { %v1237_v60 = vmax.f32 %v1232_v33, 0.0 }
 0x2ec   :  { %v1247_v38 = vcombine.high %v1237_v60, %v1237_v60  ;;  %v1254_v61 = vrot.slane %v1237_v60, %v2430_v11 }
 0x2ed   :  { %v1200_v3 = vpop.f32.mrf.mxu1 }
 0x2ee   :  { %v1261_v4 = vrot.slane %v1247_v38, %v2430_v11  ;;  %v1262_v5 = vcombine.high %v1254_v61, %v1254_v61  ;;  %v1338_v22 = vsel %vm582_vm0, %v1254_v61, -inf  ;;  %v1224_v37 = vmul.f32 %v2656_v29, %v1200_v3 }
 0x2ef   :  { %v1339_v1 = vrot.slane %v1338_v22, 4  ;;  %v2159_v48 = vpop.f32.mrf.mxu1 }
 0x2f0   :  { %v1263_v62 = vcombine.high %v1261_v4, %v1261_v4  ;;  %v1345_v7 = vsel %vm582_vm0, %v1262_v5, -inf  ;;  %v1352_v8 = vsel %vm582_vm0, %v1261_v4, -inf  ;;  %v1233_v9 = vadd.f32 %v2661_v55, %v1224_v37 }
 0x2f1   :  { %v1340_v12 = vmax.f32 %v1338_v22, %v1339_v1  ;;  %v1346_v13 = vrot.slane %v1345_v7, 4  ;;  %v1353_v15 = vrot.slane %v1352_v8, 4 }
 0x2f2   :  { %v1359_v41 = vsel %vm582_vm0, %v1263_v62, -inf  ;;  %v1238_v51 = vmax.f32 %v1233_v9, 0.0 }
 0x2f3   :  { %v1341_v58 = vrot.slane %v1340_v12, 2  ;;  %v1347_v17 = vmax.f32 %v1345_v7, %v1346_v13  ;;  %v1354_v18 = vmax.f32 %v1352_v8, %v1353_v15  ;;  %v1360_v19 = vrot.slane %v1359_v41, 4 }
 0x2f4   :  { %v1264_v20 = vcombine.high %v1238_v51, %v1238_v51  ;;  %v1271_v21 = vrot.slane %v1238_v51, %v2430_v11 }
 0x2f5   :  { %v1342_v23 = vmax.f32 %v1340_v12, %v1341_v58  ;;  %v1348_v24 = vrot.slane %v1347_v17, 2  ;;  %v1355_v25 = vrot.slane %v1354_v18, 2  ;;  %v1361_v27 = vmax.f32 %v1359_v41, %v1360_v19 }
 0x2f6   :  { %v1278_v28 = vrot.slane %v1264_v20, %v2430_v11  ;;  %v1279_v30 = vcombine.high %v1271_v21, %v1271_v21  ;;  %v1366_v31 = vsel %vm582_vm0, %v1271_v21, -inf  ;;  %v1205_v32 = vpop.f32.mrf.mxu1 }
 0x2f7   :  { %v1343_v35 = vrot.slane %v1342_v23, 1  ;;  %v1349_v36 = vmax.f32 %v1347_v17, %v1348_v24  ;;  %v1356_v40 = vmax.f32 %v1354_v18, %v1355_v25  ;;  %v1362_v42 = vrot.slane %v1361_v27, 2 }
 0x2f8   :  { %v1280_v43 = vcombine.high %v1278_v28, %v1278_v28  ;;  %v1367_v44 = vrot.slane %v1366_v31, 4  ;;  %v1373_v45 = vsel %vm582_vm0, %v1279_v30, -inf  ;;  %v1380_v34 = vsel %vm582_vm0, %v1278_v28, -inf  ;;  %v2162_v0 = vpop.f32.mrf.mxu1 }
 0x2f9   :  { %v1344_v14 = vmax.f32 %v1342_v23, %v1343_v35  ;;  %v1350_v16 = vrot.slane %v1349_v36, 1  ;;  %v1357_v39 = vrot.slane %v1356_v40, 1  ;;  %v1363_v46 = vmax.f32 %v1361_v27, %v1362_v42 }
 0x2fa   :  { %v1368_v54 = vmax.f32 %v1366_v31, %v1367_v44  ;;  %v1374_v2 = vrot.slane %v1373_v45, 4  ;;  %v1381_v47 = vrot.slane %v1380_v34, 4  ;;  %v1387_v26 = vsel %vm582_vm0, %v1280_v43, -inf  ;;  %v1210_v49 = vpop.f32.mrf.mxu1 }
 0x2fb   :  { %v1351_v63 = vmax.f32 %v1349_v36, %v1350_v16  ;;  %v1358_v6 = vmax.f32 %v1356_v40, %v1357_v39  ;;  %v1364_v50 = vrot.slane %v1363_v46, 1  ;;  %v1388_v52 = vrot.slane %v1387_v26, 4 }
 0x2fc   :  { %v1369_v53 = vrot.slane %v1368_v54, 2  ;;  %v1375_v56 = vmax.f32 %v1373_v45, %v1374_v2  ;;  %v1382_v57 = vmax.f32 %v1380_v34, %v1381_v47  ;;  %v1225_v59 = vmul.f32 %v2656_v29, %v1205_v32  ;;  %v2165_v33 = vpop.f32.mrf.mxu1 }
 0x2fd   :  { %v1365_v60 = vmax.f32 %v1363_v46, %v1364_v50  ;;  %v1466_v38 = vsel %vm839_vm3, %v1351_v63, %v1344_v14  ;;  %v1389_v61 = vmax.f32 %v1387_v26, %v1388_v52  ;;  %v1226_v3 = vmul.f32 %v2656_v29, %v1210_v49 }
 0x2fe   :  { %v1467_v4 = vsel %vm841_vm4, %v1358_v6, %v1466_v38  ;;  %v1370_v5 = vmax.f32 %v1368_v54, %v1369_v53  ;;  %v1376_v22 = vrot.slane %v1375_v56, 2  ;;  %v1383_v37 = vrot.slane %v1382_v57, 2  ;;  %v1215_v1 = vpop.f32.mrf.mxu1 }
 0x2ff   :  { %v1390_v48 = vrot.slane %v1389_v61, 2  ;;  %v1234_v62 = vadd.f32 %v2661_v55, %v1225_v59  ;;  %v1235_v7 = vadd.f32 %v2661_v55, %v1226_v3  ;;  %v1227_v8 = vmul.f32 %v2656_v29, %v1215_v1 }
 0x300   :  { %v1371_v9 = vrot.slane %v1370_v5, 1  ;;  %v1377_v12 = vmax.f32 %v1375_v56, %v1376_v22  ;;  %v1384_v13 = vmax.f32 %v1382_v57, %v1383_v37  ;;  %v2168_v15 = vpop.f32.mrf.mxu1  ;;  %v1468_v17 = vsel %vm843_vm6, %v1365_v60, %v1467_v4 }
 0x301   :  { %v1239_v41 = vmax.f32 %v1234_v62, 0.0  ;;  %v1240_v51 = vmax.f32 %v1235_v7, 0.0  ;;  %v1236_v58 = vadd.f32 %v2661_v55, %v1227_v8  ;;  %v2688_v21 = vmax.f32 %v1389_v61, %v1390_v48 }
 0x302   :  { %v1372_v18 = vmax.f32 %v1370_v5, %v1371_v9  ;;  %v1378_v19 = vrot.slane %v1377_v12, 1  ;;  %v1385_v20 = vrot.slane %v1384_v13, 1 }
 0x303   :  { %v1281_v23 = vcombine.high %v1239_v41, %v1239_v41  ;;  %v1288_v24 = vrot.slane %v1239_v41, %v2430_v11  ;;  %v1298_v25 = vcombine.high %v1240_v51, %v1240_v51  ;;  %v1305_v29 = vrot.slane %v1240_v51, %v2430_v11 }
 0x304   :  { %v1379_v27 = vmax.f32 %v1377_v12, %v1378_v19  ;;  %v2692_v28 = vmax.f32 %v1384_v13, %v1385_v20  ;;  %v1241_v30 = vmax.f32 %v1236_v58, 0.0  ;;  %v1469_v31 = vsel %vm845_vm7, %v1372_v18, %v1468_v17 }
 0x305   :  { %v1295_v55 = vrot.slane %v1281_v23, %v2430_v11  ;;  %v1296_v32 = vcombine.high %v1288_v24, %v1288_v24  ;;  %v1312_v35 = vrot.slane %v1298_v25, %v2430_v11  ;;  %v1313_v36 = vcombine.high %v1305_v29, %v1305_v29 }
 0x306   :  { %v1415_v40 = vsel %vm582_vm0, %v1305_v29, -inf  ;;  %v1321_v42 = vrot.slane %v1241_v30, %v2430_v11  ;;  %v1470_v43 = vsel %vm847_vm8, %v1379_v27, %v1469_v31  ;;  %v1392_v44 = vrot.slane %v2688_v21, 1 }
 0x307   :  { %v1297_v45 = vcombine.high %v1295_v55, %v1295_v55  ;;  %v1394_v34 = vsel %vm582_vm0, %v1296_v32, -inf  ;;  %v1401_v0 = vsel %vm582_vm0, %v1295_v55, -inf  ;;  %v1314_v14 = vcombine.high %v1312_v35, %v1312_v35 }
 0x308   :  { %v1395_v16 = vrot.slane %v1394_v34, 4  ;;  %v1402_v39 = vrot.slane %v1401_v0, 4  ;;  %v1416_v46 = vrot.slane %v1415_v40, 4  ;;  %v1422_v54 = vsel %vm582_vm0, %v1313_v36, -inf }
 0x309   :  { %v1408_v2 = vsel %vm582_vm0, %v1297_v45, -inf  ;;  %v1423_v47 = vrot.slane %v1422_v54, 4  ;;  %v1429_v26 = vsel %vm582_vm0, %v1312_v35, -inf  ;;  %v1436_v49 = vsel %vm582_vm0, %v1314_v14, -inf }
 0x30a   :  { %v1396_v63 = vmax.f32 %v1394_v34, %v1395_v16  ;;  %v1403_v6 = vmax.f32 %v1401_v0, %v1402_v39  ;;  %v1409_v50 = vrot.slane %v1408_v2, 4  ;;  %v1417_v52 = vmax.f32 %v1415_v40, %v1416_v46 }
 0x30b   :  { %v1424_v53 = vmax.f32 %v1422_v54, %v1423_v47  ;;  %v1430_v56 = vrot.slane %v1429_v26, 4  ;;  %v1437_v57 = vrot.slane %v1436_v49, 4  ;;  %v1443_v59 = vsel %vm582_vm0, %v1321_v42, -inf }
 0x30c   :  { %v1397_v33 = vrot.slane %v1396_v63, 2  ;;  %v1404_v60 = vrot.slane %v1403_v6, 2  ;;  %v1410_v38 = vmax.f32 %v1408_v2, %v1409_v50  ;;  %v1418_v61 = vrot.slane %v1417_v52, 2 }
 0x30d   :  { %v1425_v3 = vrot.slane %v1424_v53, 2  ;;  %v1431_v4 = vmax.f32 %v1429_v26, %v1430_v56  ;;  %v1438_v5 = vmax.f32 %v1436_v49, %v1437_v57  ;;  %v1444_v22 = vrot.slane %v1443_v59, 4 }
 0x30e   :  { %v1398_v37 = vmax.f32 %v1396_v63, %v1397_v33  ;;  %v1405_v1 = vmax.f32 %v1403_v6, %v1404_v60  ;;  %v1411_v48 = vrot.slane %v1410_v38, 2  ;;  %v1419_v62 = vmax.f32 %v1417_v52, %v1418_v61  ;;  %v1615_v33 = vld [vmem:[%s2827_s1 + $0x30] sm:$0xff] }
 0x30f   :  { %v1426_v7 = vmax.f32 %v1424_v53, %v1425_v3  ;;  %v1432_v8 = vrot.slane %v1431_v4, 2  ;;  %v1439_v9 = vrot.slane %v1438_v5, 2  ;;  %v1445_v12 = vmax.f32 %v1443_v59, %v1444_v22 }
 0x310   :  { %v1399_v13 = vrot.slane %v1398_v37, 1  ;;  %v1406_v15 = vrot.slane %v1405_v1, 1  ;;  %v1412_v41 = vmax.f32 %v1410_v38, %v1411_v48  ;;  %v1420_v51 = vrot.slane %v1419_v62, 1 }
 0x311   :  { %v1427_v58 = vrot.slane %v1426_v7, 1  ;;  %v1433_v17 = vmax.f32 %v1431_v4, %v1432_v8  ;;  %v1440_v18 = vmax.f32 %v1438_v5, %v1439_v9  ;;  %v1446_v19 = vrot.slane %v1445_v12, 2 }
 0x312   :  { %v1400_v20 = vmax.f32 %v1398_v37, %v1399_v13  ;;  %v1407_v23 = vmax.f32 %v1405_v1, %v1406_v15  ;;  %v1413_v24 = vrot.slane %v1412_v41, 1  ;;  %v1421_v25 = vmax.f32 %v1419_v62, %v1420_v51 }
 0x313   :  { %v1434_v29 = vrot.slane %v1433_v17, 1  ;;  %v1441_v27 = vrot.slane %v1440_v18, 1  ;;  %v1447_v30 = vmax.f32 %v1445_v12, %v1446_v19  ;;  %v1428_v32 = vmax.f32 %v1426_v7, %v1427_v58 }
 0x314   :  { %v1414_v31 = vmax.f32 %v1412_v41, %v1413_v24  ;;  %v1472_v55 = vsel %vm839_vm3, %v1407_v23, %v1400_v20  ;;  %v1471_v35 = vsel %vm849_vm9, %v2692_v28, %v1470_v43  ;;  %v1393_v45 = vmax.f32 %v2688_v21, %v1392_v44  ;;  %v1617_v21 = vld [vmem:[%s2827_s1 + $0x40] sm:$0xff]  ;;  %v1616_v44 = vld [vmem:[%s2827_s1 + $0x38] sm:$0xff] }
 0x315   :  { %v1435_v36 = vmax.f32 %v1433_v17, %v1434_v29  ;;  %v1448_v40 = vrot.slane %v1447_v30, 1  ;;  %v1482_v42 = vsel %vm876_vm10, 0.0, %v1471_v35  ;;  %v1442_v34 = vmax.f32 %v1440_v18, %v1441_v27  ;;  %2170 = vmatpush3.msra.mxu1 %v1617_v21  ;;  %v2074_v20 = vld [vmem:[%s2827_s1 + $0x7c] ss:$0 sm:$0xff]  ;;  %v2075_v23 = vld [vmem:[%s2827_s1 + $0x7d] ss:$0 sm:$0xff] }
 0x316   :  { %v1473_v0 = vsel %vm841_vm4, %v1414_v31, %v1472_v55  ;;  %v1490_v14 = vcombine.high %v1482_v42, %v1482_v42  ;;  %v1497_v16 = vrot.slane %v1482_v42, %v2430_v11  ;;  %v1484_v43 = vsel %vm876_vm10, %v1393_v45, 0.0  ;;  %2171 = vmatprep.subr.mxu1 %v2239_v10 }
 0x317   :  { %v1474_v39 = vsel %vm843_vm6, %v1421_v25, %v1473_v0  ;;  %v1449_v47 = vmax.f32 %v1447_v30, %v1448_v40  ;;  %v1513_v52 = vrot.slane %v1484_v43, %v2430_v11  ;;  %2172 = vmatpush3.msra.mxu1 %v1616_v44  ;;  %vm2833_vm3 = vcmask 60416  }
 0x318   :  { %v1504_v46 = vrot.slane %v1490_v14, %v2430_v11  ;;  %v1505_v54 = vcombine.high %v1497_v16, %v1497_v16  ;;  %v1475_v2 = vsel %vm845_vm7, %v1428_v32, %v1474_v39  ;;  %2173 = vmatprep.subr.mxu1 %v2239_v10  ;;  %vm2834_vm4 = vcmask 130113  }
 0x319   :  { %v1476_v28 = vsel %vm847_vm8, %v1435_v36, %v1475_v2  ;;  %v1485_v59 = vsel %vm876_vm10, %v1449_v47, 0.0  ;;  %2174 = vmatpush3.msra.mxu1 %v1615_v33  ;;  %vm2835_vm6 = vcmask 195714   ;;  %vm1845_vm8 = vcmask 123968  }
 0x31a   :  { %v1506_v26 = vcombine.high %v1504_v46, %v1504_v46  ;;  %v1538_v49 = vcombine.low %v1497_v16, %v1505_v54  ;;  %v1477_v63 = vsel %vm849_vm9, %v1442_v34, %v1476_v28  ;;  %2184 = vmatprep.subr.mxu1 %v2239_v10  ;;  %v1537_v37 = vrot.slane %v1485_v59, %v2430_v11 }
 0x31b   :  { %v1483_v6 = vsel %vm876_vm10, 0.0, %v1477_v63  ;;  %vm1853_vm9 = vcmask 189568   ;;  %vm1861_vm10 = vcmask 255168  }
 0x31c   :  { %v1539_v50 = vcombine.low %v1504_v46, %v1506_v26  ;;  %v1514_v53 = vcombine.high %v1483_v6, %v1483_v6  ;;  %v1521_v56 = vrot.slane %v1483_v6, %v2430_v11  ;;  %v1546_v57 = vrot.slane %v1538_v49, %v2430_v11 }
 0x31e   :  { %v1553_v60 = vrot.slane %v1539_v50, %v2430_v11  ;;  %v1528_v38 = vrot.slane %v1514_v53, %v2430_v11  ;;  %v1529_v61 = vcombine.high %v1521_v56, %v1521_v56  ;;  %v1555_v3 = vcombine.low %v1513_v52, %v1521_v56 }
 0x320   :  { %v1554_v4 = vcombine.low %v1546_v57, %v1553_v60  ;;  %v1556_v5 = vcombine.low %v1529_v61, %v1528_v38  ;;  %v1530_v22 = vcombine.high %v1528_v38, %v1528_v38  ;;  %v1563_v1 = vrot.slane %v1555_v3, %v2430_v11 }
 0x322   :  { %1588 = vrot.lane.b32.xlu0 %v1554_v4, %s2237_s15  ;;  %1584 = vst.msk [vmem:[#allocation2] sm:$0xff] %vm1049_vm11, %v1554_v4  ;;  %v1570_v48 = vrot.slane %v1556_v5, %v2430_v11  ;;  %v1572_v62 = vcombine.low %v1530_v22, %v1537_v37 }
 0x324   :  { %v1571_v7 = vcombine.low %v1563_v1, %v1570_v48  ;;  %v1579_v8 = vrot.slane %v1572_v62, %v2430_v11 }
 0x326   :  { %1600 = vrot.lane.b32.xlu0 %v1554_v4, %s2242_s8  ;;  %1590 = vrot.lane.b32.xlu1 %v1571_v7, %s2237_s15  ;;  %1585 = vst.msk [vmem:[#allocation2 + $0x8] sm:$0xff] %vm1049_vm11, %v1571_v7  ;;  %v1583_v9 = vsel %vm256_vm1, %v1579_v8, 0.0  ;;  %v1867_v4 = vld [vmem:[%s2827_s1 + $0x60] sm:$0xff]  ;;  %vm2836_vm1 = vcmask 1041409   ;;  %vm1873_vm11 = vcmask 261120  }
 0x327   :  { %1586 = vst.msk [vmem:[#allocation2 + $0x10] sm:$0xf] %vm2833_vm3, %v1583_v9  ;;  %vm2839_vm7 = vmmov %vm2836_vm1 }
 0x32a   :  { %1592 = vrot.lane.b32.xlu0 %v1583_v9, %s2237_s15  ;;  %1602 = vrot.lane.b32.xlu1 %v1571_v7, %s2242_s8 }
 0x32e   :  { %1604 = vrot.lane.b32.xlu1 %v1583_v9, %s2242_s8 }
 0x394   :  { %v1589_v12 = vpop.permute.xlu0 %1588 }
 0x395   :  { %1597 = vst.msk [vmem:[#allocation2 - $0x1] sm:$0xfe] %vm2834_vm4, %v1589_v12 }
 0x398   :  { %v1601_v13 = vpop.permute.xlu0 %1600  ;;  %v1591_v15 = vpop.permute.xlu1 %1590 }
 0x399   :  { %1609 = vst.msk [vmem:[#allocation2 - $0x2] sm:$0xfc] %vm2835_vm6, %v1601_v13  ;;  %v1866_v13 = vld [vmem:[%s2827_s1 + $0x58] sm:$0xff] }
 0x39a   :  { %1598 = vst.msk [vmem:[#allocation2 + $0x7] sm:$0xff] %vm1074_vm15, %v1591_v15 }
 0x39c   :  { %v1593_v41 = vpop.permute.xlu0 %1592  ;;  %v1603_v51 = vpop.permute.xlu1 %1602 }
 0x39d   :  { %1599 = vst.msk [vmem:[#allocation2 + $0xf] sm:$0x1f] %vm1078_vm14, %v1593_v41 }
 0x39e   :  { %1610 = vst.msk [vmem:[#allocation2 + $0x6] sm:$0xff] %vm1097_vm5, %v1603_v51  ;;  %vm2838_vm5 = vmmov %vm2836_vm1 }
 0x3a0   :  { %v1605_v58 = vpop.permute.xlu1 %1604 }
 0x3a1   :  { %1611 = vst.msk [vmem:[#allocation2 + $0xe] sm:$0x3f] %vm1101_vm13, %v1605_v58 }
 0x3a5   :  { %v1612_v17 = vld [vmem:[#allocation2] sm:$0xff] }
 0x3a6   :  { %2176 = vmatmul.mubr.msk.f32.vlgmr.msra.gmra.mxu1 %vm1113_vm12, %v1612_v17 }
 0x3a7   :  { %2178 = vmatprep.mubr.msk.f32.mxu1 %vm2240_vm2, %v2239_v10  ;;  %2185 = vmatpush3.msra.mxu1 %v1867_v4 }
 0x3a8   :  { %v1613_v18 = vld [vmem:[#allocation2 + $0x8] sm:$0xff]  ;;  %v1614_v19 = vld [vmem:[#allocation2 + $0x10] sm:$0xf]  ;;  %2186 = vmatprep.subr.mxu1 %v2239_v10 }
 0x3a9   :  { %2187 = vmatpush3.msra.mxu1 %v1866_v13 }
 0x3aa   :  { %2179 = vmatmul.mubr.msk.f32.gmra.mxu1 %vm1113_vm12, %v1613_v18  ;;  %2188 = vmatprep.subr.mxu1 %v2239_v10 }
 0x3ab   :  { %2181 = vmatprep.mubr.msk.f32.mxu1 %vm2240_vm2, %v2239_v10 }
 0x3ae   :  { %2182 = vmatmul.mubr.msk.f32.gmra.mxu1 %vm1113_vm12, %v1614_v19  ;;  %vm2036_vm12 = vcmask 25600  }
 0x3af   :  { %2192 = vmatprep.mubr.msk.f32.mxu1 %vm2240_vm2, %v2239_v10  ;;  %vm2837_vm2 = vmmov %vm2836_vm1 }
 0x466   :  { %v1695_v24 = vpop.f32.mrf.mxu1 }
 0x467   :  { %v1713_v25 = vmul.f32 %v2074_v20, %v1695_v24 }
 0x468   :  { %v2177_v29 = vpop.f32.mrf.mxu1 }
 0x469   :  { %v1720_v27 = vadd.f32 %v2075_v23, %v1713_v25 }
 0x46a   :  { %v1700_v30 = vpop.f32.mrf.mxu1 }
 0x46b   :  { %v1723_v31 = vmax.f32 %v1720_v27, 0.0  ;;  %v1714_v55 = vmul.f32 %v2074_v20, %v1700_v30 }
 0x46c   :  { %v2180_v32 = vpop.f32.mrf.mxu1 }
 0x46d   :  { %v1729_v35 = vcombine.high %v1723_v31, %v1723_v31  ;;  %v1736_v36 = vrot.slane %v1723_v31, %v2430_v11  ;;  %v1721_v40 = vadd.f32 %v2075_v23, %v1714_v55 }
 0x46e   :  { %v1705_v42 = vpop.f32.mrf.mxu1 }
 0x46f   :  { %v1743_v45 = vrot.slane %v1729_v35, %v2430_v11  ;;  %v1744_v34 = vcombine.high %v1736_v36, %v1736_v36  ;;  %v1778_v0 = vsel %vm582_vm0, %v1736_v36, -inf  ;;  %v1724_v14 = vmax.f32 %v1721_v40, 0.0 }
 0x470   :  { %v1779_v16 = vrot.slane %v1778_v0, 4  ;;  %v1715_v39 = vmul.f32 %v2074_v20, %v1705_v42  ;;  %v2183_v46 = vpop.f32.mrf.mxu1  ;;  %v1864_v20 = vld [vmem:[%s2827_s1 + $0x48] sm:$0xff] }
 0x471   :  { %v1745_v54 = vcombine.high %v1743_v45, %v1743_v45  ;;  %v1785_v2 = vsel %vm582_vm0, %v1744_v34, -inf  ;;  %v1792_v28 = vsel %vm582_vm0, %v1743_v45, -inf  ;;  %v1746_v43 = vcombine.high %v1724_v14, %v1724_v14 }
 0x472   :  { %v1780_v47 = vmax.f32 %v1778_v0, %v1779_v16  ;;  %v1786_v21 = vrot.slane %v1785_v2, 4  ;;  %v1793_v44 = vrot.slane %v1792_v28, 4  ;;  %v1753_v26 = vrot.slane %v1724_v14, %v2430_v11 }
 0x473   :  { %v1799_v49 = vsel %vm582_vm0, %v1745_v54, -inf  ;;  %v1760_v63 = vrot.slane %v1746_v43, %v2430_v11  ;;  %v1722_v6 = vadd.f32 %v2075_v23, %v1715_v39 }
 0x474   :  { %v1787_v50 = vmax.f32 %v1785_v2, %v1786_v21  ;;  %v1794_v52 = vmax.f32 %v1792_v28, %v1793_v44  ;;  %v1800_v53 = vrot.slane %v1799_v49, 4  ;;  %v1761_v56 = vcombine.high %v1753_v26, %v1753_v26  ;;  %v1949_v2 = vld [vmem:[%s2827_s1 + $0x70] sm:$0xff]  ;;  %v1948_v28 = vld [vmem:[%s2827_s1 + $0x68] sm:$0xff] }
 0x475   :  { %v1762_v57 = vcombine.high %v1760_v63, %v1760_v63  ;;  %v1813_v59 = vsel %vm582_vm0, %v1760_v63, -inf  ;;  %v1725_v33 = vmax.f32 %v1722_v6, 0.0  ;;  %v1781_v60 = vrot.slane %v1780_v47, 2  ;;  %2196 = vmatpush3.msra.mxu0 %v1949_v2 }
 0x476   :  { %v1814_v38 = vrot.slane %v1813_v59, 4  ;;  %v1788_v61 = vrot.slane %v1787_v50, 2  ;;  %v1795_v3 = vrot.slane %v1794_v52, 2  ;;  %v1806_v5 = vsel %vm582_vm0, %v1761_v56, -inf  ;;  %2197 = vmatprep.subr.mxu0 %v2239_v10 }
 0x477   :  { %v1820_v22 = vsel %vm582_vm0, %v1762_v57, -inf  ;;  %v1769_v37 = vrot.slane %v1725_v33, %v2430_v11  ;;  %v1801_v1 = vmax.f32 %v1799_v49, %v1800_v53  ;;  %v1807_v48 = vrot.slane %v1806_v5, 4  ;;  %v1865_v11 = vld [vmem:[%s2827_s1 + $0x50] sm:$0xff]  ;;  %2198 = vmatpush3.msra.mxu0 %v1948_v28  ;;  %v2076_v53 = vld [vmem:[%s2827_s1 + $0x7e] ss:$0 sm:$0xff] }
 0x478   :  { %v1815_v62 = vmax.f32 %v1813_v59, %v1814_v38  ;;  %v1821_v7 = vrot.slane %v1820_v22, 4  ;;  %v1789_v9 = vmax.f32 %v1787_v50, %v1788_v61  ;;  %v1782_v15 = vmax.f32 %v1780_v47, %v1781_v60  ;;  %2189 = vmatpush3.msra.mxu1 %v1865_v11  ;;  %v2078_v60 = vld [vmem:[%s2827_s1 + $0x7f] ss:$0 sm:$0xff] }
 0x479   :  { %v1827_v8 = vsel %vm582_vm0, %v1769_v37, -inf  ;;  %v1802_v12 = vrot.slane %v1801_v1, 2  ;;  %v1808_v41 = vmax.f32 %v1806_v5, %v1807_v48  ;;  %v1796_v18 = vmax.f32 %v1794_v52, %v1795_v3  ;;  %2190 = vmatprep.subr.mxu1 %v2239_v10 }
 0x47a   :  { %v1828_v51 = vrot.slane %v1827_v8, 4  ;;  %v1816_v58 = vrot.slane %v1815_v62, 2  ;;  %v1790_v17 = vrot.slane %v1789_v9, 1  ;;  %v1822_v19 = vmax.f32 %v1820_v22, %v1821_v7  ;;  %2191 = vmatpush3.msra.mxu1 %v1864_v20 }
 0x47b   :  { %v1809_v23 = vrot.slane %v1808_v41, 2  ;;  %v1803_v29 = vmax.f32 %v1801_v1, %v1802_v12  ;;  %v1783_v30 = vrot.slane %v1782_v15, 1  ;;  %v1797_v36 = vrot.slane %v1796_v18, 1 }
 0x47c   :  { %v1829_v24 = vmax.f32 %v1827_v8, %v1828_v51  ;;  %v1817_v25 = vmax.f32 %v1815_v62, %v1816_v58  ;;  %v1823_v27 = vrot.slane %v1822_v19, 2  ;;  %v1791_v35 = vmax.f32 %v1789_v9, %v1790_v17 }
 0x47d   :  { %v1810_v31 = vmax.f32 %v1808_v41, %v1809_v23  ;;  %v1804_v34 = vrot.slane %v1803_v29, 1  ;;  %v1784_v16 = vmax.f32 %v1782_v15, %v1783_v30  ;;  %v1798_v43 = vmax.f32 %v1796_v18, %v1797_v36 }
 0x47e   :  { %v1830_v55 = vrot.slane %v1829_v24, 2  ;;  %v1818_v32 = vrot.slane %v1817_v25, 1  ;;  %v1824_v40 = vmax.f32 %v1822_v19, %v1823_v27 }
 0x47f   :  { %v1811_v42 = vrot.slane %v1810_v31, 1  ;;  %v1805_v21 = vmax.f32 %v1803_v29, %v1804_v34 }
 0x480   :  { %v1819_v45 = vmax.f32 %v1817_v25, %v1818_v32  ;;  %v1831_v0 = vmax.f32 %v1829_v24, %v1830_v55  ;;  %v1825_v14 = vrot.slane %v1824_v40, 1 }
 0x481   :  { %v1812_v39 = vmax.f32 %v1810_v31, %v1811_v42 }
 0x482   :  { %v1841_v46 = vsel %vm2836_vm1, %v1819_v45, %v1791_v35  ;;  %v1832_v54 = vrot.slane %v1831_v0, 1  ;;  %v1826_v47 = vmax.f32 %v1824_v40, %v1825_v14 }
 0x483   :  { %1842 = vrot.lane.b32.xlu0 %v1841_v46, %s2237_s15  ;;  %v1836_v26 = vsel %vm2837_vm2, %v1812_v39, %v1784_v16 }
 0x484   :  { %v1833_v44 = vmax.f32 %v1831_v0, %v1832_v54  ;;  %v1849_v49 = vsel %vm2838_vm5, %v1826_v47, %v1798_v43  ;;  %1838 = vst.msk [vmem:[#allocation2] sm:$0x3] %vm582_vm0, %v1836_v26  ;;  %vm1955_vm0 = vcmask 130048  }
 0x485   :  { %1850 = vrot.lane.b32.xlu1 %v1849_v49, %s2242_s8 }
 0x486   :  { %v1857_v63 = vsel %vm2839_vm7, %v1833_v44, %v1805_v21 }
 0x487   :  { %1858 = vrot.lane.b32.xlu0 %v1857_v63, %s2244_s20 }
 0x4f5   :  { %v1843_v6 = vpop.permute.xlu0 %1842 }
 0x4f6   :  { %1846 = vst.msk [vmem:[#allocation2] sm:$0x3] %vm1845_vm8, %v1843_v6 }
 0x4f7   :  { %v1851_v50 = vpop.permute.xlu1 %1850 }
 0x4f8   :  { %1854 = vst.msk [vmem:[#allocation2] sm:$0x3] %vm1853_vm9, %v1851_v50 }
 0x4f9   :  { %v1859_v52 = vpop.permute.xlu0 %1858 }
 0x4fa   :  { %1862 = vst.msk [vmem:[#allocation2] sm:$0x3] %vm1861_vm10, %v1859_v52 }
 0x501   :  { %v1863_v10 = vld [vmem:[#allocation2] sm:$0x3] }
 0x502   :  { %2193 = vmatmul.mubr.msk.f32.vlgmr.msra.gmra.mxu1 %vm1873_vm11, %v1863_v10 }
 0x5c2   :  { %v1943_v56 = vpop.f32.mrf.mxu1 }
 0x5c3   :  { %v1944_v57 = vadd.f32 %v2076_v53, %v1943_v56 }
 0x5c4   :  { %v2194_v59 = vpop.f32.mrf.mxu1 }
 0x5c5   :  { %v1947_v33 = vmax.f32 %v1944_v57, 0.0 }
 0x5c7   :  { %2200 = vmatmul.mubr.msk.f32.vlgmr.msra.gmra.mxu0 %vm1955_vm0, %v1947_v33 }
 0x687   :  { %v2025_v38 = vpop.f32.mrf.mxu0 }
 0x688   :  { %v2026_v61 = vadd.f32 %v2078_v60, %v2025_v38 }
 0x689   :  { %v2201_v3 = vpop.f32.mrf.mxu0 }
 0x68a   :  { %v2029_v4 = vmax.f32 %v2026_v61, 0.0 }
 0x68c   :  { %v2080_v5 = vmul.f32 -1.442695, %v2029_v4 }
 0x68e   :  { %2211 = vpow2.f32 %v2080_v5 }
 0x69b   :  { %v2212_v22 = vpop.eup %2211 }
 0x69c   :  { %v2033_v37 = vadd.f32 1.0, %v2212_v22 }
 0x69e   :  { %2213 = vrcp.f32 %v2033_v37 }
 0x6ab   :  { %v2214_v1 = vpop.eup %2213 }
 0x6ac   :  { %2037 = vst.msk [vmem:[#allocation3] sm:$0x3] %vm2036_vm12, %v2214_v1 }
 0x6ad   :  { %2226 = shalt.err (!%p2223_p4)
}
 0x6ae   :  { %2047 = dma.vmem_to_hbm [thread:$0]  %s2045_s24, 32, %s2828_s2, [#allocation4]  }
 0x6af   :  { %2235 = dma.done.wait [#allocation4], 32  }
 0x6b0   :  { %2236 = vsyncadd [#allocation4], 4294967264 }
 0x6b1   :  { %2051 = vsyncpa [#allocation4], 1 }

</bundles_post_ra>
